<compile_context>
chip_gen: v7x
topology: tpu7x:2x2x1
jax: 0.10.0
libtpu: 0.0.40
codegen_flags: <defaults>
</compile_context>

<pallas_src>
import functools

import jax
import jax.numpy as jnp
from jax.experimental import pallas as pl
from jax.experimental.pallas import tpu as pltpu


def _pick_row_tile(n, cap=1024):
    for t in (1024, 512, 256, 128, 64, 32, 16, 8):
        if t <= cap and t <= n and n % t == 0:
            return t
    return n


def _tpu_kind():
    try:
        return jax.devices()[0].device_kind.lower()
    except Exception:
        return ""


def _vmem_limit_bytes():
    kind = _tpu_kind()
    # v5e / v6e have 128 MiB physical VMEM -> allow bigger tiles; v7x only has
    # 64 MiB physical, so stay at the conservative 32 MiB scoped default there
    # (and on unknown chips).
    if "v5" in kind or "v6" in kind:
        return 64 * 1024 * 1024
    return 32 * 1024 * 1024


def _exp_dtype():
    kind = _tpu_kind()
    # bf16 transcendentals only exist on v6e / v7x EUP; keep exp in f32 elsewhere.
    return jnp.bfloat16 if ("v6" in kind or "v7" in kind) else jnp.float32


# -------------------- Pallas kernels --------------------

def _norm_qkv_kernel(x_ref, g_ref, w_ref, q_ref, kv_ref, *, sqrt_c):
    # x: [TN, C] f32, g: [1, C] f32, w: [C, 3*hidden] bf16 (softmax scale folded
    # into the Q columns) -> q: [TN, hidden] bf16, kv: [TN, 2*hidden] bf16.
    x = x_ref[...].astype(jnp.float32)
    sumsq = jnp.sum(x * x, axis=-1, keepdims=True)
    # F.normalize eps=1e-12 on the L2 norm  <=>  1e-24 on the sum of squares.
    inv = sqrt_c * jax.lax.rsqrt(jnp.maximum(sumsq, 1e-24))     # rsqrt -> EUP slot
    xn = (x * inv * g_ref[...].astype(jnp.float32)).astype(jnp.bfloat16)
    y = jnp.dot(xn, w_ref[...], preferred_element_type=jnp.float32)
    hidden = q_ref.shape[-1]
    q_ref[...] = y[:, :hidden].astype(q_ref.dtype)        # lane-aligned split (hidden=128)
    kv_ref[...] = y[:, hidden:].astype(kv_ref.dtype)


def _head_attention(q, k, v, mk, mv, exp_dtype):
    # q: [tq, d], k/v: [S, d], mk/mv: [M, d]   (all bf16; softmax scale already in q)
    sim = jax.lax.dot_general(q, k, (((1,), (1,)), ((), ())),
                              preferred_element_type=jnp.float32)     # [tq, S]
    sim_m = jax.lax.dot_general(q, mk, (((1,), (1,)), ((), ())),
                                preferred_element_type=jnp.float32)   # [tq, M]
    m = jnp.maximum(jnp.max(sim, axis=-1, keepdims=True),
                    jnp.max(sim_m, axis=-1, keepdims=True))           # f32
    p = jnp.exp((sim - m).astype(exp_dtype))                          # bf16 EUP on v6e/v7x
    p_m = jnp.exp((sim_m - m).astype(exp_dtype))
    l = (jnp.sum(p.astype(jnp.float32), axis=-1, keepdims=True) +
         jnp.sum(p_m.astype(jnp.float32), axis=-1, keepdims=True))    # f32 sum
    acc = (jnp.dot(p.astype(jnp.bfloat16), v, preferred_element_type=jnp.float32) +
           jnp.dot(p_m.astype(jnp.bfloat16), mv, preferred_element_type=jnp.float32))
    return acc * pl.reciprocal(l, approx=True)                        # [tq, d] f32


def _attention_kernel(q_ref, kv_ref, mem_ref, o_ref, *, num_heads, head_dim, exp_dtype):
    # q_ref: [tq, hidden] bf16, kv_ref: [S, 2*hidden] bf16 (k cols then v cols,
    # head-major), mem_ref: [2, heads, M, d] bf16, o_ref: [tq, hidden] bf16.
    hidden = num_heads * head_dim
    outs = []
    # TODO(synk): for large num_heads / very large S switch to lax.fori_loop over
    # heads (pl.ds lane slices) so per-head f32 temporaries don't stay live together.
    for h in range(num_heads):                      # unrolled, static slices
        q = q_ref[:, h * head_dim:(h + 1) * head_dim]
        k = kv_ref[:, h * head_dim:(h + 1) * head_dim]
        v = kv_ref[:, hidden + h * head_dim:hidden + (h + 1) * head_dim]
        out_h = _head_attention(q, k, v, mem_ref[0, h], mem_ref[1, h], exp_dtype)
        outs.append(out_h.astype(o_ref.dtype))
    o_ref[...] = jnp.concatenate(outs, axis=-1)     # single lane-dense store


def _attention_fused_out_kernel(q_ref, kv_ref, mem_ref, wo_ref, bo_ref, o_ref, *,
                                num_heads, head_dim, exp_dtype):
    # Same as _attention_kernel, but the output 1x1 conv is fused: each head's
    # [tq, d] output is contracted with wo[h] ([d, C]) into a [tq, C] f32
    # accumulator.  Only used when C % 128 == 0 so the final store is lane-dense.
    hidden = num_heads * head_dim
    acc_o = jnp.zeros(o_ref.shape, jnp.float32)
    for h in range(num_heads):
        q = q_ref[:, h * head_dim:(h + 1) * head_dim]
        k = kv_ref[:, h * head_dim:(h + 1) * head_dim]
        v = kv_ref[:, hidden + h * head_dim:hidden + (h + 1) * head_dim]
        out_h = _head_attention(q, k, v, mem_ref[0, h], mem_ref[1, h], exp_dtype)
        acc_o = acc_o + jnp.dot(out_h.astype(jnp.bfloat16), wo_ref[h],
                                preferred_element_type=jnp.float32)
    o_ref[...] = (acc_o + bo_ref[...].astype(jnp.float32)).astype(o_ref.dtype)


def _out_proj_kernel(x_ref, w_ref, b_ref, o_ref):
    # x: [TN, hidden] bf16, w: [hidden, C] bf16, b: [1, C] f32 -> o: [TN, C] f32
    o_ref[...] = (jnp.dot(x_ref[...], w_ref[...], preferred_element_type=jnp.float32)
                  + b_ref[...].astype(jnp.float32)).astype(o_ref.dtype)


# -------------------- wrapper --------------------

def full_attention_forward(x, params, *, num_heads, head_dim, q_tile_cap=512):
    B, C, H, W = x.shape
    hidden = num_heads * head_dim
    S = H * W
    N = B * S
    M = params["mem_kv"].shape[2]
    scale = float(head_dim) ** -0.5
    vmem_limit = _vmem_limit_bytes()
    exp_dtype = _exp_dtype()

    # --- RMSNorm + QKV 1x1 conv (row-tiled matmul, channels last) ---
    # TODO(synk): fold the NCHW->NHWC transpose into this kernel (read (1, C, tS)
    # blocks and transpose on the idle XLU) to drop one full HBM pass.
    x_cl = jnp.transpose(x, (0, 2, 3, 1)).reshape(N, C)
    g = params["g"].reshape(1, C).astype(jnp.float32)
    w_qkv = params["w_qkv"].reshape(3 * hidden, C).astype(jnp.float32)
    w_qkv = w_qkv.at[:hidden].multiply(scale)             # fold softmax scale into Q
    w_qkv = jnp.transpose(w_qkv).astype(jnp.bfloat16)     # [C, 3*hidden], (qkv, head, dim)

    tn = _pick_row_tile(N)
    q_flat, kv_flat = pl.pallas_call(
        functools.partial(_norm_qkv_kernel, sqrt_c=float(C) ** 0.5),
        out_shape=(jax.ShapeDtypeStruct((N, hidden), jnp.bfloat16),
                   jax.ShapeDtypeStruct((N, 2 * hidden), jnp.bfloat16)),
        grid=(N // tn,),
        in_specs=[
            pl.BlockSpec((tn, C), lambda i: (i, 0)),
            pl.BlockSpec((1, C), lambda i: (0, 0)),
            pl.BlockSpec((C, 3 * hidden), lambda i: (0, 0)),
        ],
        out_specs=(pl.BlockSpec((tn, hidden), lambda i: (i, 0)),
                   pl.BlockSpec((tn, 2 * hidden), lambda i: (i, 0))),
        compiler_params=pltpu.CompilerParams(
            dimension_semantics=("parallel",),
            vmem_limit_bytes=vmem_limit),
    )(x_cl, g, w_qkv)

    q = q_flat.reshape(B, S, hidden)                      # free reshapes
    kv = kv_flat.reshape(B, S, 2 * hidden)
    mem_kv = params["mem_kv"].astype(jnp.bfloat16)        # [2, h, M, d], tiny

    # --- attention: grid over (batch, q-tile); heads unrolled in-kernel ---
    tq = _pick_row_tile(S, cap=q_tile_cap)
    q_spec = pl.BlockSpec((None, tq, hidden), lambda b, i: (b, i, 0))
    # K/V block is resident per batch (index_map constant over the q-tile axis).
    # TODO(synk): if profiling shows exposed K/V DMA, add pipeline_mode=pl.Buffered(3).
    kv_spec = pl.BlockSpec((None, S, 2 * hidden), lambda b, i: (b, 0, 0))
    mem_spec = pl.BlockSpec((2, num_heads, M, head_dim), lambda b, i: (0, 0, 0, 0))
    attn_params = pltpu.CompilerParams(
        dimension_semantics=("parallel", "parallel"),
        vmem_limit_bytes=vmem_limit)

    fuse_out_proj = (C % 128 == 0)
    if fuse_out_proj:
        # fused output 1x1 conv: resident [heads, d, C] bf16 weight, one [tq, C] store.
        w_out = params["w_out"].reshape(C, hidden).T.reshape(num_heads, head_dim, C)
        w_out = w_out.astype(jnp.bfloat16)
        b_out = params["b_out"].reshape(1, C).astype(jnp.float32)
        out = pl.pallas_call(
            functools.partial(_attention_fused_out_kernel, num_heads=num_heads,
                              head_dim=head_dim, exp_dtype=exp_dtype),
            out_shape=jax.ShapeDtypeStruct((B, S, C), jnp.float32),
            grid=(B, S // tq),
            in_specs=[q_spec, kv_spec, mem_spec,
                      pl.BlockSpec((num_heads, head_dim, C), lambda b, i: (0, 0, 0)),
                      pl.BlockSpec((1, C), lambda b, i: (0, 0))],
            out_specs=pl.BlockSpec((None, tq, C), lambda b, i: (b, i, 0)),
            compiler_params=attn_params,
        )(q, kv, mem_kv, w_out, b_out)
        out = out.reshape(N, C)
    else:
        attn_out = pl.pallas_call(
            functools.partial(_attention_kernel, num_heads=num_heads,
                              head_dim=head_dim, exp_dtype=exp_dtype),
            out_shape=jax.ShapeDtypeStruct((B, S, hidden), jnp.bfloat16),
            grid=(B, S // tq),
            in_specs=[q_spec, kv_spec, mem_spec],
            out_specs=pl.BlockSpec((None, tq, hidden), lambda b, i: (b, i, 0)),
            compiler_params=attn_params,
        )(q, kv, mem_kv)

        # --- output 1x1 conv (row-tiled matmul); kept separate since C < 128 ---
        attn_flat = attn_out.reshape(N, hidden)           # free reshape
        w_out = params["w_out"].reshape(C, hidden).T.astype(jnp.bfloat16)  # [hidden, C]
        b_out = params["b_out"].reshape(1, C).astype(jnp.float32)
        out = pl.pallas_call(
            _out_proj_kernel,
            out_shape=jax.ShapeDtypeStruct((N, C), jnp.float32),
            grid=(N // tn,),
            in_specs=[
                pl.BlockSpec((tn, hidden), lambda i: (i, 0)),
                pl.BlockSpec((hidden, C), lambda i: (0, 0)),
                pl.BlockSpec((1, C), lambda i: (0, 0)),
            ],
            out_specs=pl.BlockSpec((tn, C), lambda i: (i, 0)),
            compiler_params=pltpu.CompilerParams(
                dimension_semantics=("parallel",),
                vmem_limit_bytes=vmem_limit),
        )(attn_flat, w_out, b_out)

    # TODO(synk): fold this NHWC->NCHW back-transpose into the final kernel's
    # out_spec (write (1, C, tS) blocks) instead of paying an XLA transpose pass.
    return jnp.transpose(out.reshape(B, H, W, C), (0, 3, 1, 2))


# -------------------- pure-JAX reference (for verification) --------------------

def full_attention_reference(x, params, *, num_heads, head_dim):
    B, C, H, W = x.shape
    S = H * W
    M = params["mem_kv"].shape[2]
    l2 = jnp.sqrt(jnp.sum(x * x, axis=1, keepdims=True))
    xn = x / jnp.maximum(l2, 1e-12) * (C ** 0.5) * params["g"].reshape(1, C, 1, 1)
    qkv = jnp.einsum("bchw,oc->bohw", xn, params["w_qkv"][:, :, 0, 0])
    q, k, v = jnp.split(qkv, 3, axis=1)

    def re(t):  # 'b (h c) x y -> b h (x y) c'
        return jnp.transpose(t.reshape(B, num_heads, head_dim, S), (0, 1, 3, 2))

    q, k, v = re(q), re(k), re(v)
    mem_k = jnp.broadcast_to(params["mem_kv"][0][None], (B, num_heads, M, head_dim))
    mem_v = jnp.broadcast_to(params["mem_kv"][1][None], (B, num_heads, M, head_dim))
    k = jnp.concatenate([mem_k, k], axis=2)
    v = jnp.concatenate([mem_v, v], axis=2)
    sim = jnp.einsum("bhsd,bhtd->bhst", q, k) * (head_dim ** -0.5)
    attn = jax.nn.softmax(sim, axis=-1)
    o = jnp.einsum("bhst,bhtd->bhsd", attn, v)
    o = jnp.transpose(o, (0, 1, 3, 2)).reshape(B, num_heads * head_dim, H, W)
    out = jnp.einsum("bchw,oc->bohw", o, params["w_out"][:, :, 0, 0])
    return out + params["b_out"].reshape(1, C, 1, 1)


# -------------------- main --------------------

if __name__ == "__main__":
    root_key = jax.random.PRNGKey(0)

    def run_case(case_idx, B, C, H, W, num_heads, head_dim, num_mem, w_scale):
        hidden = num_heads * head_dim
        key = jax.random.fold_in(root_key, case_idx)
        k_x, k_mem, k_wqkv, k_wout, k_bout = jax.random.split(key, 5)
        params = {
            "g": jnp.ones((1, C, 1, 1), jnp.float32),
            "mem_kv": jax.random.normal(k_mem, (2, num_heads, num_mem, head_dim), jnp.float32),
            "w_qkv": jax.random.normal(k_wqkv, (3 * hidden, C, 1, 1), jnp.float32) * w_scale,
            "w_out": jax.random.normal(k_wout, (C, hidden, 1, 1), jnp.float32) * w_scale,
            "b_out": jax.random.normal(k_bout, (C,), jnp.float32) * 0.01,
        }
        x = jax.random.normal(k_x, (B, C, H, W), jnp.float32)

        out = full_attention_forward(x, params, num_heads=num_heads, head_dim=head_dim)
        out = jax.block_until_ready(out)
        ref = full_attention_reference(x, params, num_heads=num_heads, head_dim=head_dim)
        assert out.shape == (B, C, H, W)
        # bf16 MXU operands + (on v6e/v7x) bf16 exp with f32 accumulation.
        assert jnp.allclose(out, ref, rtol=3e-2, atol=3e-2), \
            f"case {case_idx}: max abs diff {jnp.max(jnp.abs(out - ref))}"

    # Module-default config (C=4 -> separate out-proj kernel, single q tile).
    run_case(0, B=2, C=4, H=16, W=16, num_heads=4, head_dim=32, num_mem=4, w_scale=0.1)
    # Larger-C config exercising the fused out-proj path + multiple q tiles per batch.
    run_case(1, B=2, C=128, H=32, W=32, num_heads=4, head_dim=32, num_mem=4, w_scale=0.05)

    print("KERNEL_OK")
</pallas_src>

<mosaic_0001>
module attributes {stable_mosaic.version = 11 : i64} {
  func.func @_norm_qkv_kernel(%arg0: i32, %arg1: memref<512x4xf32, #tpu.memory_space<vmem>>, %arg2: memref<1x4xf32, #tpu.memory_space<vmem>>, %arg3: memref<4x384xbf16, #tpu.memory_space<vmem>>, %arg4: memref<512x128xbf16, #tpu.memory_space<vmem>>, %arg5: memref<512x256xbf16, #tpu.memory_space<vmem>>) attributes {dimension_semantics = [#tpu.dimension_semantics<parallel>], iteration_bounds = array<i64: 1>, scalar_prefetch = 0 : i64, scratch_operands = 0 : i64, tpu.core_type = #tpu.core_type<tc>, window_params = [{transform_indices = @transform_0, window_bounds = array<i64: 512, 4>}, {pipeline_mode = #tpu.pipeline_mode<synchronous>, transform_indices = @transform_1, window_bounds = array<i64: 1, 4>}, {pipeline_mode = #tpu.pipeline_mode<synchronous>, transform_indices = @transform_2, window_bounds = array<i64: 4, 384>}, {transform_indices = @transform_3, window_bounds = array<i64: 512, 128>}, {transform_indices = @transform_4, window_bounds = array<i64: 512, 256>}]} {
    %c0 = arith.constant 0 : index
    %c0_0 = arith.constant 0 : index
    %0 = vector.load %arg1[%c0, %c0_0] : memref<512x4xf32, #tpu.memory_space<vmem>>, vector<512x4xf32>
    %1 = arith.mulf %0, %0 : vector<512x4xf32>
    %cst = arith.constant dense<0.000000e+00> : vector<512xf32>
    %2 = vector.multi_reduction <add>, %1, %cst [1] : vector<512x4xf32> to vector<512xf32>
    %3 = vector.shape_cast %2 : vector<512xf32> to vector<512x1xf32>
    %cst_1 = arith.constant 1.000000e-24 : f32
    %4 = vector.broadcast %cst_1 : f32 to vector<512x1xf32>
    %5 = arith.maximumf %3, %4 : vector<512x1xf32>
    %6 = math.rsqrt %5 : vector<512x1xf32>
    %cst_2 = arith.constant 2.000000e+00 : f32
    %7 = vector.broadcast %cst_2 : f32 to vector<512x1xf32>
    %8 = arith.mulf %7, %6 : vector<512x1xf32>
    %9 = vector.broadcast %8 : vector<512x1xf32> to vector<512x4xf32>
    %10 = arith.mulf %0, %9 : vector<512x4xf32>
    %c0_3 = arith.constant 0 : index
    %c0_4 = arith.constant 0 : index
    %11 = vector.load %arg2[%c0_3, %c0_4] : memref<1x4xf32, #tpu.memory_space<vmem>>, vector<1x4xf32>
    %12 = vector.broadcast %11 : vector<1x4xf32> to vector<512x4xf32>
    %13 = arith.mulf %10, %12 : vector<512x4xf32>
    %14 = arith.truncf %13 : vector<512x4xf32> to vector<512x4xbf16>
    %c0_5 = arith.constant 0 : index
    %c0_6 = arith.constant 0 : index
    %15 = vector.load %arg3[%c0_5, %c0_6] : memref<4x384xbf16, #tpu.memory_space<vmem>>, vector<4x384xbf16>
    %cst_7 = arith.constant dense<0.000000e+00> : vector<512x384xf32>
    %16 = tpu.matmul %14, %15, %cst_7 {dimension_numbers = #tpu.dot_dimension_numbers<[1], [0], [0], [1], [0, 0, 1, 1], [], []>} : vector<512x4xbf16>, vector<4x384xbf16>, vector<512x384xf32> -> vector<512x384xf32>
    %17 = vector.extract_strided_slice %16 {offsets = [0, 0], sizes = [512, 128], strides = [1, 1]} : vector<512x384xf32> to vector<512x128xf32>
    %18 = arith.truncf %17 : vector<512x128xf32> to vector<512x128xbf16>
    %c0_8 = arith.constant 0 : index
    %c0_9 = arith.constant 0 : index
    %19 = vector.load %arg4[%c0_8, %c0_9] : memref<512x128xbf16, #tpu.memory_space<vmem>>, vector<512x128xbf16>
    tpu.vector_store %arg4[%c0_8, %c0_9], %18 {strides = array<i32>} : memref<512x128xbf16, #tpu.memory_space<vmem>>, vector<512x128xbf16>,
    %20 = vector.extract_strided_slice %16 {offsets = [0, 128], sizes = [512, 256], strides = [1, 1]} : vector<512x384xf32> to vector<512x256xf32>
    %21 = arith.truncf %20 : vector<512x256xf32> to vector<512x256xbf16>
    %c0_10 = arith.constant 0 : index
    %c0_11 = arith.constant 0 : index
    %22 = vector.load %arg5[%c0_10, %c0_11] : memref<512x256xbf16, #tpu.memory_space<vmem>>, vector<512x256xbf16>
    tpu.vector_store %arg5[%c0_10, %c0_11], %21 {strides = array<i32>} : memref<512x256xbf16, #tpu.memory_space<vmem>>, vector<512x256xbf16>,
    return
  }
  func.func @transform_0(%arg0: i32) -> (i32, i32) {
    %c0_i32 = arith.constant 0 : i32
    %c0_i32_0 = arith.constant 0 : i32
    return %arg0, %c0_i32 : i32, i32
  }
  func.func @transform_1(%arg0: i32) -> (i32, i32) {
    %c0_i32 = arith.constant 0 : i32
    %c0_i32_0 = arith.constant 0 : i32
    %c0_i32_1 = arith.constant 0 : i32
    return %c0_i32, %c0_i32_0 : i32, i32
  }
  func.func @transform_2(%arg0: i32) -> (i32, i32) {
    %c0_i32 = arith.constant 0 : i32
    %c0_i32_0 = arith.constant 0 : i32
    %c0_i32_1 = arith.constant 0 : i32
    return %c0_i32, %c0_i32_0 : i32, i32
  }
  func.func @transform_3(%arg0: i32) -> (i32, i32) {
    %c0_i32 = arith.constant 0 : i32
    %c0_i32_0 = arith.constant 0 : i32
    return %arg0, %c0_i32 : i32, i32
  }
  func.func @transform_4(%arg0: i32) -> (i32, i32) {
    %c0_i32 = arith.constant 0 : i32
    %c0_i32_0 = arith.constant 0 : i32
    return %arg0, %c0_i32 : i32, i32
  }
}

</mosaic_0001>

<bundles_post_ra>
// kernel: tpu_custom_call.1
= control target key start
LH: loop header
LB: loop body
LE: loop exit
PB: predicated region body
PF: predicated region fallthrough
CT: control target
= control target key end

     0   :  { %10 = vsyncpa [#allocation3], 0  ;;  %vm147_vm0 = vcmask 31744   ;;  %s4071_s0 = inlined_call_operand.vmem [shape: f32[512,4], index: 0, kind: input, shape index: {}]   ;;  %s4072_s1 = inlined_call_operand.vmem [shape: f32[1,4], index: 1, kind: input, shape index: {}]   ;;  %s4073_s2 = inlined_call_operand.vmem [shape: bf16[4,384], index: 2, kind: input, shape index: {}]   ;;  %s4074_s3 = inlined_call_operand.hbm [shape: bf16[512,128], index: 3, kind: output, shape index: {0}]   ;;  %s4075_s4 = inlined_call_operand.hbm [shape: bf16[512,256], index: 4, kind: output, shape index: {1}]  }
   0x1   :  { %v3120_v0 = vld [vmem:[%s4071_s0 + $0x180] sm:$0xff]  ;;  %v3130_v2 = vld [vmem:[%s4071_s0 + $0x188] sm:$0xff]  ;;  %v3148_v8 = vld [vmem:[%s4071_s0 + $0x18] sm:$0xff] }
   0x2   :  { %v3125_v1 = vld [vmem:[%s4071_s0] sm:$0xff]  ;;  %v131_v3 = vmul.f32 %v3120_v0, %v3120_v0  ;;  %v132_v5 = vmul.f32 %v3130_v2, %v3130_v2  ;;  %v3141_v6 = vld [vmem:[%s4071_s0 + $0x8] sm:$0xff]  ;;  %v3153_v9 = vld [vmem:[%s4071_s0 + $0x10] sm:$0xff]  ;;  %v86_v14 = vmul.f32 %v3148_v8, %v3148_v8 }
   0x3   :  { %v83_v4 = vmul.f32 %v3125_v1, %v3125_v1  ;;  %v84_v7 = vmul.f32 %v3141_v6, %v3141_v6  ;;  %v85_v15 = vmul.f32 %v3153_v9, %v3153_v9  ;;  %v3166_v16 = vld [vmem:[%s4071_s0 + $0x198] sm:$0xff]  ;;  %v3171_v17 = vld [vmem:[%s4071_s0 + $0x190] sm:$0xff]  ;;  %v3182_v22 = vld [vmem:[%s4071_s0 + $0x28] sm:$0xff] }
   0x4   :  { %v292_v10 = vsel %vm147_vm0, %v131_v3, 0.0  ;;  %v295_v12 = vsel %vm147_vm0, %v132_v5, 0.0  ;;  %v157_v18 = vsel %vm147_vm0, %v86_v14, 0.0  ;;  %v134_v20 = vmul.f32 %v3166_v16, %v3166_v16  ;;  %v3187_v23 = vld [vmem:[%s4071_s0 + $0x20] sm:$0xff]  ;;  %v3198_v28 = vld [vmem:[%s4071_s0 + $0x1a8] sm:$0xff]  ;;  %v3214_v34 = vld [vmem:[%s4071_s0 + $0x38] sm:$0xff] }
   0x5   :  { %v148_v11 = vsel %vm147_vm0, %v83_v4, 0.0  ;;  %293 = vadd.xlane.f32.xlu1 %v292_v10  ;;  %v151_v13 = vsel %vm147_vm0, %v84_v7, 0.0  ;;  %v154_v19 = vsel %vm147_vm0, %v85_v15, 0.0  ;;  %v133_v21 = vmul.f32 %v3171_v17, %v3171_v17  ;;  %v3203_v29 = vld [vmem:[%s4071_s0 + $0x1a0] sm:$0xff]  ;;  %v3219_v35 = vld [vmem:[%s4071_s0 + $0x30] sm:$0xff] }
   0x6   :  { %149 = vadd.xlane.f32.xlu0 %v148_v11  ;;  %v301_v24 = vsel %vm147_vm0, %v134_v20, 0.0  ;;  %v88_v26 = vmul.f32 %v3182_v22, %v3182_v22  ;;  %v87_v27 = vmul.f32 %v3187_v23, %v3187_v23  ;;  %v136_v32 = vmul.f32 %v3198_v28, %v3198_v28 }
   0x7   :  { %v298_v25 = vsel %vm147_vm0, %v133_v21, 0.0  ;;  %v135_v33 = vmul.f32 %v3203_v29, %v3203_v29 }
   0x8   :  { %v163_v30 = vsel %vm147_vm0, %v88_v26, 0.0  ;;  %v160_v31 = vsel %vm147_vm0, %v87_v27, 0.0 }
   0x9   :  { %296 = vadd.xlane.f32.xlu1 %v295_v12 }
   0xa   :  { %152 = vadd.xlane.f32.xlu0 %v151_v13 }
   0xd   :  { %158 = vadd.xlane.f32.xlu1 %v157_v18 }
   0xe   :  { %155 = vadd.xlane.f32.xlu0 %v154_v19 }
  0x11   :  { %302 = vadd.xlane.f32.xlu1 %v301_v24 }
  0x12   :  { %299 = vadd.xlane.f32.xlu0 %v298_v25 }
  0x15   :  { %164 = vadd.xlane.f32.xlu1 %v163_v30 }
  0x16   :  { %161 = vadd.xlane.f32.xlu0 %v160_v31 }
  0x17   :  { %11 = vsyncpa [#allocation5], 0  ;;  %v307_v36 = vsel %vm147_vm0, %v136_v32, 0.0  ;;  %v304_v37 = vsel %vm147_vm0, %v135_v33, 0.0  ;;  %v90_v38 = vmul.f32 %v3214_v34, %v3214_v34  ;;  %v89_v39 = vmul.f32 %v3219_v35, %v3219_v35  ;;  %v3230_v40 = vld [vmem:[%s4071_s0 + $0x1b8] sm:$0xff]  ;;  %v3235_v41 = vld [vmem:[%s4071_s0 + $0x1b0] sm:$0xff] }
  0x18   :  { %v138_v44 = vmul.f32 %v3230_v40, %v3230_v40  ;;  %v137_v45 = vmul.f32 %v3235_v41, %v3235_v41  ;;  %v3246_v46 = vld [vmem:[%s4071_s0 + $0x48] sm:$0xff]  ;;  %v3251_v47 = vld [vmem:[%s4071_s0 + $0x40] sm:$0xff]  ;;  %v705_v58 = vlaneseq  ;;  %v3278_v59 = vld [vmem:[%s4071_s0 + $0x58] sm:$0xff]  ;;  %v3084_v61 = vmov 1983009808   ;;  %s3087_s24 = smov [#allocation4]  }
  0x19   :  { %308 = vadd.xlane.f32.xlu1 %v307_v36  ;;  %v169_v42 = vsel %vm147_vm0, %v90_v38, 0.0  ;;  %v166_v43 = vsel %vm147_vm0, %v89_v39, 0.0  ;;  %v92_v50 = vmul.f32 %v3246_v46, %v3246_v46  ;;  %v91_v51 = vmul.f32 %v3251_v47, %v3251_v47  ;;  %v3262_v52 = vld [vmem:[%s4071_s0 + $0x1c8] sm:$0xff]  ;;  %v3267_v53 = vld [vmem:[%s4071_s0 + $0x1c0] sm:$0xff]  ;;  %v3283_v60 = vld [vmem:[%s4071_s0 + $0x50] sm:$0xff]  ;;  %s2250_s25 = sshll.u32 %s3087_s24, 4  ;;  %s4033_s25 = int_to_ptr.vmem [resolvable:$true] %s2250_s25 }
  0x1a   :  { %305 = vadd.xlane.f32.xlu0 %v304_v37  ;;  %v313_v48 = vsel %vm147_vm0, %v138_v44, 0.0  ;;  %v310_v49 = vsel %vm147_vm0, %v137_v45, 0.0  ;;  %v140_v54 = vmul.f32 %v3262_v52, %v3262_v52  ;;  %v139_v55 = vmul.f32 %v3267_v53, %v3267_v53  ;;  %v699_v11 = vld [vmem:[%s4073_s2] sm:$0x3f]  ;;  %v3297_v12 = vld [vmem:[%s4071_s0 + $0x1d8] sm:$0xff]  ;;  %v3302_v13 = vld [vmem:[%s4071_s0 + $0x1d0] sm:$0xff] }
  0x1b   :  { %v175_v56 = vsel %vm147_vm0, %v92_v50, 0.0  ;;  %v172_v57 = vsel %vm147_vm0, %v91_v51, 0.0  ;;  %v703_v62 = vunpack.c.l.s4 %v3084_v61  ;;  %v706_v63 = vshrl.u32 %v705_v58, 7  ;;  %v3313_v24 = vld [vmem:[%s4071_s0 + $0x68] sm:$0xff]  ;;  %v3318_v25 = vld [vmem:[%s4071_s0 + $0x60] sm:$0xff]  ;;  %v3350_v45 = vld [vmem:[%s4071_s0 + $0x78] sm:$0xff] }
  0x1c   :  { %v319_v4 = vsel %vm147_vm0, %v140_v54, 0.0  ;;  %v316_v5 = vsel %vm147_vm0, %v139_v55, 0.0  ;;  %v94_v7 = vmul.f32 %v3278_v59, %v3278_v59  ;;  %v93_v10 = vmul.f32 %v3283_v60, %v3283_v60  ;;  %v3334_v37 = vld [vmem:[%s4071_s0 + $0x1e8] sm:$0xff]  ;;  %v3339_v38 = vld [vmem:[%s4071_s0 + $0x1e0] sm:$0xff]  ;;  %v3366_v55 = vld [vmem:[%s4071_s0 + $0x1f8] sm:$0xff] }
  0x1d   :  { %170 = vadd.xlane.f32.xlu1 %v169_v42  ;;  %v704_v3 = vunpack.c.0.s8 %v703_v62  ;;  %vm813_vm1 = vcmask 1041408   ;;  %v142_v20 = vmul.f32 %v3297_v12, %v3297_v12  ;;  %v141_v21 = vmul.f32 %v3302_v13, %v3302_v13 }
  0x1e   :  { %167 = vadd.xlane.f32.xlu0 %v166_v43  ;;  %v181_v18 = vsel %vm147_vm0, %v94_v7, 0.0  ;;  %v178_v19 = vsel %vm147_vm0, %v93_v10, 0.0  ;;  %v4076_v30 = vmov 0   ;;  %v96_v33 = vmul.f32 %v3313_v24, %v3313_v24 }
  0x1f   :  { %v707_v14 = vsub.s32 %v704_v3, %v706_v63  ;;  %855 = vmatprep.mubr.bf16.mxu0 %v4076_v30  ;;  %1095 = vmatprep.mubr.bf16.mxu1 %v4076_v30  ;;  %v325_v31 = vsel %vm147_vm0, %v142_v20, 0.0  ;;  %v322_v32 = vsel %vm147_vm0, %v141_v21, 0.0  ;;  %v95_v36 = vmul.f32 %v3318_v25, %v3318_v25  ;;  %v3382_v3 = vld [vmem:[%s4071_s0 + $0x88] sm:$0xff] }
  0x20   :  { %v187_v39 = vsel %vm147_vm0, %v96_v33, 0.0  ;;  %v144_v43 = vmul.f32 %v3334_v37, %v3334_v37  ;;  %v143_v44 = vmul.f32 %v3339_v38, %v3339_v38  ;;  %v98_v51 = vmul.f32 %v3350_v45, %v3350_v45 }
  0x21   :  { %314 = vadd.xlane.f32.xlu1 %v313_v48  ;;  %v708_v15 = vrot.slane %v699_v11, %v707_v14  ;;  %v184_v42 = vsel %vm147_vm0, %v95_v36, 0.0  ;;  %v3355_v48 = vld [vmem:[%s4071_s0 + $0x70] sm:$0xff]  ;;  %v146_v62 = vmul.f32 %v3366_v55, %v3366_v55 }
  0x22   :  { %311 = vadd.xlane.f32.xlu0 %v310_v49  ;;  %v331_v49 = vsel %vm147_vm0, %v144_v43, 0.0  ;;  %v328_v50 = vsel %vm147_vm0, %v143_v44, 0.0  ;;  %v97_v54 = vmul.f32 %v3355_v48, %v3355_v48  ;;  %v193_v58 = vsel %vm147_vm0, %v98_v51, 0.0  ;;  %v3434_v43 = vld [vmem:[%s4071_s0 + $0xb8] sm:$0xff]  ;;  %v3439_v44 = vld [vmem:[%s4071_s0 + $0xb0] sm:$0xff] }
  0x23   :  { %v716_v26 = vcombine.high %v708_v15, %v708_v15  ;;  %v815_v27 = vsel %vm813_vm1, %v708_v15, 0  ;;  %v337_v7 = vsel %vm147_vm0, %v146_v62, 0.0  ;;  %v106_v51 = vmul.f32 %v3434_v43, %v3434_v43 }
  0x24   :  { %v190_v61 = vsel %vm147_vm0, %v97_v54, 0.0  ;;  %v105_v54 = vmul.f32 %v3439_v44, %v3439_v44 }
  0x25   :  { %176 = vadd.xlane.f32.xlu1 %v175_v56  ;;  %2877 = vmatprep.subr.msk.bf16.mxu1 %vm813_vm1, %v716_v26  ;;  %v3371_v56 = vld [vmem:[%s4071_s0 + $0x1f0] sm:$0xff] }
  0x26   :  { %173 = vadd.xlane.f32.xlu0 %v172_v57  ;;  %2266 = vmatprep.subr.msk.bf16.mxu0 %vm813_vm1, %v716_v26  ;;  %v701_v57 = vcombine.high %v699_v11, %v699_v11  ;;  %v145_v63 = vmul.f32 %v3371_v56, %v3371_v56  ;;  %v100_v11 = vmul.f32 %v3382_v3, %v3382_v3  ;;  %v214_v62 = vsel %vm147_vm0, %v105_v54, 0.0 }
  0x27   :  { %2878 = vmatpush1.bf16.msra.mxu1 %v815_v27  ;;  %824 = vmatpush1.bf16.msra.mxu0 %v815_v27 }
  0x28   :  { %v334_v10 = vsel %vm147_vm0, %v145_v63, 0.0  ;;  %v199_v20 = vsel %vm147_vm0, %v100_v11, 0.0 }
  0x29   :  { %320 = vadd.xlane.f32.xlu1 %v319_v4  ;;  %v3387_v4 = vld [vmem:[%s4071_s0 + $0x80] sm:$0xff] }
  0x2a   :  { %317 = vadd.xlane.f32.xlu0 %v316_v5  ;;  %v715_v5 = vrot.slane %v701_v57, %v707_v14  ;;  %v99_v15 = vmul.f32 %v3387_v4, %v3387_v4  ;;  %v3450_v57 = vld [vmem:[%s4071_s0 + $0xc8] sm:$0xff] }
  0x2b   :  { %v108_v63 = vmul.f32 %v3450_v57, %v3450_v57 }
  0x2c   :  { %2879 = vmatprep.subr.msk.bf16.mxu1 %vm813_vm1, %v715_v5  ;;  %v3407_v14 = vsel %vm813_vm1, %v715_v5, 0  ;;  %v196_v21 = vsel %vm147_vm0, %v99_v15, 0.0 }
  0x2d   :  { %182 = vadd.xlane.f32.xlu1 %v181_v18  ;;  %v3398_v18 = vld [vmem:[%s4071_s0 + $0x98] sm:$0xff]  ;;  %v223_v11 = vsel %vm147_vm0, %v108_v63, 0.0  ;;  %v52_v63 = vld [vmem:[%s4071_s0 + $0x108] sm:$0xff] }
  0x2e   :  { %179 = vadd.xlane.f32.xlu0 %v178_v19  ;;  %v3403_v19 = vld [vmem:[%s4071_s0 + $0x90] sm:$0xff]  ;;  %v102_v26 = vmul.f32 %v3398_v18, %v3398_v18 }
  0x2f   :  { %v101_v27 = vmul.f32 %v3403_v19, %v3403_v19 }
  0x30   :  { %v205_v33 = vsel %vm147_vm0, %v102_v26, 0.0  ;;  %v3482_v26 = vld [vmem:[%s4071_s0 + $0xe8] sm:$0xff] }
  0x31   :  { %326 = vadd.xlane.f32.xlu1 %v325_v31  ;;  %v3418_v31 = vld [vmem:[%s4071_s0 + $0xa8] sm:$0xff]  ;;  %v202_v36 = vsel %vm147_vm0, %v101_v27, 0.0  ;;  %4080 = vst [vmem:[#allocation8_spill] sm:$0xff] %v3482_v26  ;;  %v3487_v27 = vld [vmem:[%s4071_s0 + $0xe0] sm:$0xff] }
  0x32   :  { %323 = vadd.xlane.f32.xlu0 %v322_v32  ;;  %v3423_v32 = vld [vmem:[%s4071_s0 + $0xa0] sm:$0xff]  ;;  %4081 = vst [vmem:[#allocation9_spill] sm:$0xff] %v3487_v27 }
  0x35   :  { %188 = vadd.xlane.f32.xlu1 %v187_v39  ;;  %v104_v39 = vmul.f32 %v3418_v31, %v3418_v31 }
  0x36   :  { %185 = vadd.xlane.f32.xlu0 %v184_v42  ;;  %v103_v42 = vmul.f32 %v3423_v32, %v3423_v32 }
  0x39   :  { %332 = vadd.xlane.f32.xlu1 %v331_v49  ;;  %v211_v49 = vsel %vm147_vm0, %v104_v39, 0.0  ;;  %v112_v39 = vmul.f32 %v3482_v26, %v3482_v26 }
  0x3a   :  { %329 = vadd.xlane.f32.xlu0 %v328_v50  ;;  %v208_v50 = vsel %vm147_vm0, %v103_v42, 0.0  ;;  %v111_v42 = vmul.f32 %v3487_v27, %v3487_v27 }
  0x3c   :  { %v232_v54 = vsel %vm147_vm0, %v111_v42, 0.0 }
  0x3d   :  { %194 = vadd.xlane.f32.xlu1 %v193_v58  ;;  %v3455_v58 = vld [vmem:[%s4071_s0 + $0xc0] sm:$0xff] }
  0x3e   :  { %191 = vadd.xlane.f32.xlu0 %v190_v61  ;;  %v217_v61 = vsel %vm147_vm0, %v106_v51, 0.0  ;;  %v107_v5 = vmul.f32 %v3455_v58, %v3455_v58  ;;  %v235_v51 = vsel %vm147_vm0, %v112_v39, 0.0 }
  0x40   :  { %v220_v15 = vsel %vm147_vm0, %v107_v5, 0.0  ;;  %v51_v5 = vld [vmem:[%s4071_s0 + $0x100] sm:$0xff] }
  0x41   :  { %338 = vadd.xlane.f32.xlu1 %v337_v7  ;;  %v3466_v7 = vld [vmem:[%s4071_s0 + $0xd8] sm:$0xff] }
  0x42   :  { %335 = vadd.xlane.f32.xlu0 %v334_v10  ;;  %v3471_v10 = vld [vmem:[%s4071_s0 + $0xd0] sm:$0xff] }
  0x45   :  { %200 = vadd.xlane.f32.xlu1 %v199_v20  ;;  %v110_v20 = vmul.f32 %v3466_v7, %v3466_v7 }
  0x46   :  { %197 = vadd.xlane.f32.xlu0 %v196_v21  ;;  %v109_v21 = vmul.f32 %v3471_v10, %v3471_v10 }
  0x49   :  { %206 = vadd.xlane.f32.xlu1 %v205_v33  ;;  %v229_v33 = vsel %vm147_vm0, %v110_v20, 0.0  ;;  %v116_v20 = vmul.f32 %v52_v63, %v52_v63 }
  0x4a   :  { %203 = vadd.xlane.f32.xlu0 %v202_v36  ;;  %v226_v36 = vsel %vm147_vm0, %v109_v21, 0.0  ;;  %v115_v21 = vmul.f32 %v51_v5, %v51_v5 }
  0x4b   :  { %v247_v39 = vsel %vm147_vm0, %v116_v20, 0.0 }
  0x4c   :  { %v244_v42 = vsel %vm147_vm0, %v115_v21, 0.0 }
  0x4d   :  { %212 = vadd.xlane.f32.xlu1 %v211_v49  ;;  %v50_v49 = vld [vmem:[%s4071_s0 + $0xf8] sm:$0xff] }
  0x4e   :  { %209 = vadd.xlane.f32.xlu0 %v208_v50  ;;  %v49_v50 = vld [vmem:[%s4071_s0 + $0xf0] sm:$0xff] }
  0x51   :  { %218 = vadd.xlane.f32.xlu1 %v217_v61  ;;  %v114_v61 = vmul.f32 %v50_v49, %v50_v49 }
  0x52   :  { %215 = vadd.xlane.f32.xlu0 %v214_v62  ;;  %v113_v62 = vmul.f32 %v49_v50, %v49_v50 }
  0x55   :  { %224 = vadd.xlane.f32.xlu1 %v223_v11  ;;  %v241_v11 = vsel %vm147_vm0, %v114_v61, 0.0 }
  0x56   :  { %221 = vadd.xlane.f32.xlu0 %v220_v15  ;;  %v238_v15 = vsel %vm147_vm0, %v113_v62, 0.0 }
  0x59   :  { %230 = vadd.xlane.f32.xlu1 %v229_v33  ;;  %v54_v33 = vld [vmem:[%s4071_s0 + $0x118] sm:$0xff] }
  0x5a   :  { %227 = vadd.xlane.f32.xlu0 %v226_v36  ;;  %v53_v36 = vld [vmem:[%s4071_s0 + $0x110] sm:$0xff]  ;;  %v118_v49 = vmul.f32 %v54_v33, %v54_v33 }
  0x5b   :  { %v117_v50 = vmul.f32 %v53_v36, %v53_v36 }
  0x5c   :  { %v253_v61 = vsel %vm147_vm0, %v118_v49, 0.0 }
  0x5d   :  { %236 = vadd.xlane.f32.xlu1 %v235_v51  ;;  %v56_v51 = vld [vmem:[%s4071_s0 + $0x128] sm:$0xff]  ;;  %v250_v62 = vsel %vm147_vm0, %v117_v50, 0.0 }
  0x5e   :  { %233 = vadd.xlane.f32.xlu0 %v232_v54  ;;  %v55_v54 = vld [vmem:[%s4071_s0 + $0x120] sm:$0xff]  ;;  %v120_v63 = vmul.f32 %v56_v51, %v56_v51 }
  0x5f   :  { %v119_v5 = vmul.f32 %v55_v54, %v55_v54 }
  0x60   :  { %v259_v20 = vsel %vm147_vm0, %v120_v63, 0.0 }
  0x61   :  { %242 = vadd.xlane.f32.xlu1 %v241_v11  ;;  %v58_v11 = vld [vmem:[%s4071_s0 + $0x138] sm:$0xff]  ;;  %v256_v21 = vsel %vm147_vm0, %v119_v5, 0.0 }
  0x62   :  { %239 = vadd.xlane.f32.xlu0 %v238_v15  ;;  %v57_v15 = vld [vmem:[%s4071_s0 + $0x130] sm:$0xff]  ;;  %v122_v33 = vmul.f32 %v58_v11, %v58_v11 }
  0x63   :  { %v121_v36 = vmul.f32 %v57_v15, %v57_v15 }
  0x64   :  { %v265_v49 = vsel %vm147_vm0, %v122_v33, 0.0 }
  0x65   :  { %248 = vadd.xlane.f32.xlu1 %v247_v39  ;;  %v60_v39 = vld [vmem:[%s4071_s0 + $0x148] sm:$0xff]  ;;  %v262_v50 = vsel %vm147_vm0, %v121_v36, 0.0 }
  0x66   :  { %245 = vadd.xlane.f32.xlu0 %v244_v42  ;;  %v59_v42 = vld [vmem:[%s4071_s0 + $0x140] sm:$0xff]  ;;  %v124_v51 = vmul.f32 %v60_v39, %v60_v39 }
  0x67   :  { %v123_v54 = vmul.f32 %v59_v42, %v59_v42 }
  0x68   :  { %v271_v63 = vsel %vm147_vm0, %v124_v51, 0.0 }
  0x69   :  { %254 = vadd.xlane.f32.xlu1 %v253_v61  ;;  %v62_v61 = vld [vmem:[%s4071_s0 + $0x158] sm:$0xff]  ;;  %v268_v5 = vsel %vm147_vm0, %v123_v54, 0.0 }
  0x6a   :  { %251 = vadd.xlane.f32.xlu0 %v250_v62  ;;  %v61_v62 = vld [vmem:[%s4071_s0 + $0x150] sm:$0xff]  ;;  %v126_v11 = vmul.f32 %v62_v61, %v62_v61 }
  0x6b   :  { %v125_v15 = vmul.f32 %v61_v62, %v61_v62 }
  0x6c   :  { %v277_v33 = vsel %vm147_vm0, %v126_v11, 0.0 }
  0x6d   :  { %260 = vadd.xlane.f32.xlu1 %v259_v20  ;;  %v64_v20 = vld [vmem:[%s4071_s0 + $0x168] sm:$0xff]  ;;  %v274_v36 = vsel %vm147_vm0, %v125_v15, 0.0 }
  0x6e   :  { %257 = vadd.xlane.f32.xlu0 %v256_v21  ;;  %v63_v21 = vld [vmem:[%s4071_s0 + $0x160] sm:$0xff]  ;;  %v128_v39 = vmul.f32 %v64_v20, %v64_v20 }
  0x6f   :  { %v127_v42 = vmul.f32 %v63_v21, %v63_v21 }
  0x70   :  { %v283_v51 = vsel %vm147_vm0, %v128_v39, 0.0 }
  0x71   :  { %266 = vadd.xlane.f32.xlu1 %v265_v49  ;;  %v66_v49 = vld [vmem:[%s4071_s0 + $0x178] sm:$0xff]  ;;  %v280_v54 = vsel %vm147_vm0, %v127_v42, 0.0 }
  0x72   :  { %263 = vadd.xlane.f32.xlu0 %v262_v50  ;;  %v65_v50 = vld [vmem:[%s4071_s0 + $0x170] sm:$0xff]  ;;  %v130_v61 = vmul.f32 %v66_v49, %v66_v49 }
  0x73   :  { %v129_v62 = vmul.f32 %v65_v50, %v65_v50 }
  0x75   :  { %272 = vadd.xlane.f32.xlu1 %v271_v63  ;;  %v289_v63 = vsel %vm147_vm0, %v130_v61, 0.0 }
  0x76   :  { %269 = vadd.xlane.f32.xlu0 %v268_v5  ;;  %v286_v5 = vsel %vm147_vm0, %v129_v62, 0.0 }
  0x79   :  { %278 = vadd.xlane.f32.xlu1 %v277_v33 }
  0x7a   :  { %275 = vadd.xlane.f32.xlu0 %v274_v36 }
  0x7d   :  { %284 = vadd.xlane.f32.xlu1 %v283_v51 }
  0x7e   :  { %281 = vadd.xlane.f32.xlu0 %v280_v54 }
  0x81   :  { %290 = vadd.xlane.f32.xlu1 %v289_v63 }
  0x82   :  { %287 = vadd.xlane.f32.xlu0 %v286_v5 }
  0x92   :  { %v294_v11 = vpop.xlane.xlu1 %293 }
  0x93   :  { %v150_v15 = vpop.xlane.xlu0 %149  ;;  %v388_v20 = vmax.f32 %v294_v11, 1e-24 }
  0x94   :  { %v340_v21 = vmax.f32 %v150_v15, 1e-24 }
  0x95   :  { %2889 = vrsqrt.f32 %v388_v20 }
  0x96   :  { %2891 = vrsqrt.f32 %v340_v21  ;;  %v297_v33 = vpop.xlane.xlu1 %296 }
  0x97   :  { %v153_v36 = vpop.xlane.xlu0 %152  ;;  %v389_v39 = vmax.f32 %v297_v33, 1e-24 }
  0x98   :  { %v341_v42 = vmax.f32 %v153_v36, 1e-24 }
  0x99   :  { %2893 = vrsqrt.f32 %v389_v39 }
  0x9a   :  { %2895 = vrsqrt.f32 %v341_v42  ;;  %v159_v49 = vpop.xlane.xlu1 %158 }
  0x9b   :  { %v156_v50 = vpop.xlane.xlu0 %155  ;;  %v343_v51 = vmax.f32 %v159_v49, 1e-24 }
  0x9c   :  { %v342_v54 = vmax.f32 %v156_v50, 1e-24 }
  0x9d   :  { %2897 = vrsqrt.f32 %v343_v51  ;;  %v3573_v51 = vld [vmem:[%s4072_s1] ss:$0 sm:$0xff] }
  0x9e   :  { %2899 = vrsqrt.f32 %v342_v54  ;;  %v303_v61 = vpop.xlane.xlu1 %302 }
  0x9f   :  { %v300_v62 = vpop.xlane.xlu0 %299  ;;  %v2890_v63 = vpop.eup %2889  ;;  %v391_v5 = vmax.f32 %v303_v61, 1e-24 }
  0xa0   :  { %v390_v11 = vmax.f32 %v300_v62, 1e-24  ;;  %v2892_v15 = vpop.eup %2891  ;;  %v516_v20 = vmul.f32 2.0, %v2890_v63 }
  0xa1   :  { %v468_v21 = vmul.f32 2.0, %v2892_v15  ;;  %2901 = vrsqrt.f32 %v391_v5 }
  0xa2   :  { %2903 = vrsqrt.f32 %v390_v11  ;;  %v165_v33 = vpop.xlane.xlu1 %164  ;;  %v580_v49 = vmul.f32 %v516_v20, %v3120_v0 }
  0xa3   :  { %v162_v36 = vpop.xlane.xlu0 %161  ;;  %v2894_v39 = vpop.eup %2893  ;;  %v345_v42 = vmax.f32 %v165_v33, 1e-24  ;;  %v532_v54 = vmul.f32 %v468_v21, %v3125_v1 }
  0xa4   :  { %v344_v30 = vmax.f32 %v162_v36, 1e-24  ;;  %v2896_v27 = vpop.eup %2895  ;;  %v517_v50 = vmul.f32 2.0, %v2894_v39  ;;  %v651_v36 = vmul.f32 %v3573_v51, %v580_v49 }
  0xa5   :  { %v469_v61 = vmul.f32 2.0, %v2896_v27  ;;  %2905 = vrsqrt.f32 %v345_v42  ;;  %v603_v1 = vmul.f32 %v3573_v51, %v532_v54 }
  0xa6   :  { %v581_v62 = vmul.f32 %v517_v50, %v3130_v2  ;;  %2907 = vrsqrt.f32 %v344_v30  ;;  %v309_v63 = vpop.xlane.xlu1 %308 }
  0xa7   :  { %v306_v5 = vpop.xlane.xlu0 %305  ;;  %v2898_v11 = vpop.eup %2897  ;;  %v533_v15 = vmul.f32 %v469_v61, %v3141_v6  ;;  %v393_v33 = vmax.f32 %v309_v63, 1e-24 }
  0xa8   :  { %v392_v0 = vmax.f32 %v306_v5, 1e-24  ;;  %v2900_v20 = vpop.eup %2899  ;;  %v652_v39 = vmul.f32 %v3573_v51, %v581_v62  ;;  %v471_v26 = vmul.f32 2.0, %v2898_v11 }
  0xa9   :  { %v604_v27 = vmul.f32 %v3573_v51, %v533_v15  ;;  %v470_v21 = vmul.f32 2.0, %v2900_v20  ;;  %2909 = vrsqrt.f32 %v393_v33 }
  0xaa   :  { %v535_v2 = vmul.f32 %v471_v26, %v3148_v8  ;;  %2911 = vrsqrt.f32 %v392_v0  ;;  %v171_v30 = vpop.xlane.xlu1 %170  ;;  %v3583_v6 = vpack.c.bf16 %v652_v39, %v651_v36  ;;  %v4082_v0 = vmov 0  }
  0xab   :  { %v168_v42 = vpop.xlane.xlu0 %167  ;;  %v2902_v50 = vpop.eup %2901  ;;  %v534_v61 = vmul.f32 %v470_v21, %v3153_v9  ;;  %v347_v49 = vmax.f32 %v171_v30, 1e-24  ;;  %v3586_v62 = vpack.c.bf16 %v604_v27, %v603_v1 }
  0xac   :  { %v346_v63 = vmax.f32 %v168_v42, 1e-24  ;;  %v2904_v5 = vpop.eup %2903  ;;  %v519_v54 = vmul.f32 2.0, %v2902_v50  ;;  %2291 = vmatmul.mubr.msk.bf16.vlgmr.msra.gmra.mrb[0].mxu1 %vm147_vm0, %v3583_v6  ;;  %v606_v8 = vmul.f32 %v3573_v51, %v535_v2 }
  0xad   :  { %v518_v11 = vmul.f32 2.0, %v2904_v5  ;;  %2913 = vrsqrt.f32 %v347_v49  ;;  %2267 = vmatmul.mubr.msk.bf16.vlgmr.msra.gmra.mrb[0].mxu0 %vm147_vm0, %v3586_v62  ;;  %2812 = vmatpush3.bf16.msra.mxu1 %v3407_v14  ;;  %v605_v9 = vmul.f32 %v3573_v51, %v534_v61 }
  0xae   :  { %v583_v26 = vmul.f32 %v519_v54, %v3166_v16  ;;  %2915 = vrsqrt.f32 %v346_v63  ;;  %v315_v15 = vpop.xlane.xlu1 %314  ;;  %865 = vmatprep.mubr.bf16.mxu0 %v4082_v0  ;;  %1105 = vmatprep.mubr.bf16.mxu1 %v4082_v0 }
  0xaf   :  { %v312_v33 = vpop.xlane.xlu0 %311  ;;  %v2906_v20 = vpop.eup %2905  ;;  %v582_v36 = vmul.f32 %v518_v11, %v3171_v17  ;;  %v395_v39 = vmax.f32 %v315_v15, 1e-24  ;;  %v3602_v61 = vpack.c.bf16 %v606_v8, %v605_v9 }
  0xb0   :  { %v394_v1 = vmax.f32 %v312_v33, 1e-24  ;;  %v2908_v27 = vpop.eup %2907  ;;  %v654_v14 = vmul.f32 %v3573_v51, %v583_v26  ;;  %v473_v21 = vmul.f32 2.0, %v2906_v20 }
  0xb1   :  { %v653_v2 = vmul.f32 %v3573_v51, %v582_v36  ;;  %v472_v30 = vmul.f32 2.0, %v2908_v27  ;;  %2917 = vrsqrt.f32 %v395_v39 }
  0xb2   :  { %v537_v16 = vmul.f32 %v473_v21, %v3182_v22  ;;  %2919 = vrsqrt.f32 %v394_v1  ;;  %v177_v42 = vpop.xlane.xlu1 %176 }
  0xb3   :  { %v174_v50 = vpop.xlane.xlu0 %173  ;;  %v2910_v49 = vpop.eup %2909  ;;  %v536_v17 = vmul.f32 %v472_v30, %v3187_v23  ;;  %v349_v63 = vmax.f32 %v177_v42, 1e-24  ;;  %v3605_v54 = vpack.c.bf16 %v654_v14, %v653_v2 }
  0xb4   :  { %v348_v5 = vmax.f32 %v174_v50, 1e-24  ;;  %v2912_v11 = vpop.eup %2911  ;;  %v521_v26 = vmul.f32 2.0, %v2910_v49  ;;  %v608_v22 = vmul.f32 %v3573_v51, %v537_v16 }
  0xb5   :  { %v520_v15 = vmul.f32 2.0, %v2912_v11  ;;  %2921 = vrsqrt.f32 %v349_v63  ;;  %2268 = vmatmul.mubr.msk.bf16.gmra.mrb[4].mxu0 %vm147_vm0, %v3602_v61  ;;  %2292 = vmatmul.mubr.msk.bf16.gmra.mrb[4].mxu1 %vm147_vm0, %v3605_v54  ;;  %v607_v8 = vmul.f32 %v3573_v51, %v536_v17 }
  0xb6   :  { %v585_v23 = vmul.f32 %v521_v26, %v3198_v28  ;;  %2923 = vrsqrt.f32 %v348_v5  ;;  %v321_v9 = vpop.xlane.xlu1 %320  ;;  %875 = vmatprep.mubr.bf16.mxu0 %v4082_v0  ;;  %1115 = vmatprep.mubr.bf16.mxu1 %v4082_v0 }
  0xb7   :  { %v318_v33 = vpop.xlane.xlu0 %317  ;;  %v2914_v20 = vpop.eup %2913  ;;  %v584_v36 = vmul.f32 %v520_v15, %v3203_v29  ;;  %v397_v39 = vmax.f32 %v321_v9, 1e-24  ;;  %v3620_v50 = vpack.c.bf16 %v608_v22, %v607_v8 }
  0xb8   :  { %v396_v1 = vmax.f32 %v318_v33, 1e-24  ;;  %v2916_v27 = vpop.eup %2915  ;;  %v656_v14 = vmul.f32 %v3573_v51, %v585_v23  ;;  %v475_v21 = vmul.f32 2.0, %v2914_v20 }
  0xb9   :  { %v655_v2 = vmul.f32 %v3573_v51, %v584_v36  ;;  %v474_v30 = vmul.f32 2.0, %v2916_v27  ;;  %2925 = vrsqrt.f32 %v397_v39 }
  0xba   :  { %v539_v28 = vmul.f32 %v475_v21, %v3214_v34  ;;  %2927 = vrsqrt.f32 %v396_v1  ;;  %v183_v16 = vpop.xlane.xlu1 %182 }
  0xbb   :  { %v180_v42 = vpop.xlane.xlu0 %179  ;;  %v2918_v49 = vpop.eup %2917  ;;  %v538_v29 = vmul.f32 %v474_v30, %v3219_v35  ;;  %v351_v17 = vmax.f32 %v183_v16, 1e-24  ;;  %v3623_v5 = vpack.c.bf16 %v656_v14, %v655_v2 }
  0xbc   :  { %v350_v63 = vmax.f32 %v180_v42, 1e-24  ;;  %v2920_v11 = vpop.eup %2919  ;;  %v523_v26 = vmul.f32 2.0, %v2918_v49  ;;  %v610_v34 = vmul.f32 %v3573_v51, %v539_v28 }
  0xbd   :  { %v522_v15 = vmul.f32 2.0, %v2920_v11  ;;  %2929 = vrsqrt.f32 %v351_v17  ;;  %2269 = vmatmul.mubr.msk.bf16.gmra.mrb[8].mxu0 %vm147_vm0, %v3620_v50  ;;  %2293 = vmatmul.mubr.msk.bf16.gmra.mrb[8].mxu1 %vm147_vm0, %v3623_v5  ;;  %v609_v22 = vmul.f32 %v3573_v51, %v538_v29 }
  0xbe   :  { %v587_v35 = vmul.f32 %v523_v26, %v3230_v40  ;;  %2931 = vrsqrt.f32 %v350_v63  ;;  %v327_v8 = vpop.xlane.xlu1 %326  ;;  %885 = vmatprep.mubr.bf16.mxu0 %v4082_v0  ;;  %1125 = vmatprep.mubr.bf16.mxu1 %v4082_v0 }
  0xbf   :  { %v324_v23 = vpop.xlane.xlu0 %323  ;;  %v2922_v9 = vpop.eup %2921  ;;  %v586_v33 = vmul.f32 %v522_v15, %v3235_v41  ;;  %v399_v20 = vmax.f32 %v327_v8, 1e-24  ;;  %v3638_v28 = vpack.c.bf16 %v610_v34, %v609_v22 }
  0xc0   :  { %v398_v36 = vmax.f32 %v324_v23, 1e-24  ;;  %v2924_v39 = vpop.eup %2923  ;;  %v658_v1 = vmul.f32 %v3573_v51, %v587_v35  ;;  %v477_v27 = vmul.f32 2.0, %v2922_v9 }
  0xc1   :  { %v657_v14 = vmul.f32 %v3573_v51, %v586_v33  ;;  %v476_v21 = vmul.f32 2.0, %v2924_v39  ;;  %2933 = vrsqrt.f32 %v399_v20 }
  0xc2   :  { %v541_v40 = vmul.f32 %v477_v27, %v3246_v46  ;;  %2935 = vrsqrt.f32 %v398_v36  ;;  %v189_v2 = vpop.xlane.xlu1 %188 }
  0xc3   :  { %v186_v30 = vpop.xlane.xlu0 %185  ;;  %v2926_v16 = vpop.eup %2925  ;;  %v540_v41 = vmul.f32 %v476_v21, %v3251_v47  ;;  %v353_v42 = vmax.f32 %v189_v2, 1e-24  ;;  %v3641_v29 = vpack.c.bf16 %v658_v1, %v657_v14 }
  0xc4   :  { %v352_v49 = vmax.f32 %v186_v30, 1e-24  ;;  %v2928_v17 = vpop.eup %2927  ;;  %v525_v63 = vmul.f32 2.0, %v2926_v16  ;;  %v612_v46 = vmul.f32 %v3573_v51, %v541_v40 }
  0xc5   :  { %v524_v11 = vmul.f32 2.0, %v2928_v17  ;;  %2937 = vrsqrt.f32 %v353_v42  ;;  %2270 = vmatmul.mubr.msk.bf16.gmra.mrb[12].mxu0 %vm147_vm0, %v3638_v28  ;;  %2294 = vmatmul.mubr.msk.bf16.gmra.mrb[12].mxu1 %vm147_vm0, %v3641_v29  ;;  %v611_v26 = vmul.f32 %v3573_v51, %v540_v41 }
  0xc6   :  { %v589_v47 = vmul.f32 %v525_v63, %v3262_v52  ;;  %2939 = vrsqrt.f32 %v352_v49  ;;  %v333_v15 = vpop.xlane.xlu1 %332  ;;  %895 = vmatprep.mubr.bf16.mxu0 %v4082_v0  ;;  %1135 = vmatprep.mubr.bf16.mxu1 %v4082_v0 }
  0xc7   :  { %v330_v34 = vpop.xlane.xlu0 %329  ;;  %v2930_v22 = vpop.eup %2929  ;;  %v588_v35 = vmul.f32 %v524_v11, %v3267_v53  ;;  %v401_v8 = vmax.f32 %v333_v15, 1e-24  ;;  %v3656_v14 = vpack.c.bf16 %v612_v46, %v611_v26 }
  0xc8   :  { %v400_v23 = vmax.f32 %v330_v34, 1e-24  ;;  %v2932_v9 = vpop.eup %2931  ;;  %v660_v33 = vmul.f32 %v3573_v51, %v589_v47  ;;  %v479_v20 = vmul.f32 2.0, %v2930_v22 }
  0xc9   :  { %v659_v36 = vmul.f32 %v3573_v51, %v588_v35  ;;  %v478_v39 = vmul.f32 2.0, %v2932_v9  ;;  %2941 = vrsqrt.f32 %v401_v8 }
  0xca   :  { %v543_v52 = vmul.f32 %v479_v20, %v3278_v59  ;;  %2943 = vrsqrt.f32 %v400_v23  ;;  %v195_v1 = vpop.xlane.xlu1 %194 }
  0xcb   :  { %v192_v27 = vpop.xlane.xlu0 %191  ;;  %v2934_v21 = vpop.eup %2933  ;;  %v542_v53 = vmul.f32 %v478_v39, %v3283_v60  ;;  %v355_v40 = vmax.f32 %v195_v1, 1e-24  ;;  %v3659_v30 = vpack.c.bf16 %v660_v33, %v659_v36 }
  0xcc   :  { %v354_v2 = vmax.f32 %v192_v27, 1e-24  ;;  %v2936_v16 = vpop.eup %2935  ;;  %v527_v41 = vmul.f32 2.0, %v2934_v21  ;;  %v614_v59 = vmul.f32 %v3573_v51, %v543_v52 }
  0xcd   :  { %v526_v42 = vmul.f32 2.0, %v2936_v16  ;;  %2945 = vrsqrt.f32 %v355_v40  ;;  %2271 = vmatmul.mubr.msk.bf16.gmra.mrb[16].mxu0 %vm147_vm0, %v3656_v14  ;;  %2295 = vmatmul.mubr.msk.bf16.gmra.mrb[16].mxu1 %vm147_vm0, %v3659_v30  ;;  %v613_v49 = vmul.f32 %v3573_v51, %v542_v53 }
  0xce   :  { %v591_v60 = vmul.f32 %v527_v41, %v3297_v12  ;;  %2947 = vrsqrt.f32 %v354_v2  ;;  %v339_v17 = vpop.xlane.xlu1 %338  ;;  %905 = vmatprep.mubr.bf16.mxu0 %v4082_v0  ;;  %1145 = vmatprep.mubr.bf16.mxu1 %v4082_v0 }
  0xcf   :  { %v336_v63 = vpop.xlane.xlu0 %335  ;;  %v2938_v11 = vpop.eup %2937  ;;  %v590_v46 = vmul.f32 %v526_v42, %v3302_v13  ;;  %v403_v26 = vmax.f32 %v339_v17, 1e-24  ;;  %v3674_v23 = vpack.c.bf16 %v614_v59, %v613_v49 }
  0xd0   :  { %v402_v47 = vmax.f32 %v336_v63, 1e-24  ;;  %v2940_v15 = vpop.eup %2939  ;;  %v662_v34 = vmul.f32 %v3573_v51, %v591_v60  ;;  %v481_v22 = vmul.f32 2.0, %v2938_v11 }
  0xd1   :  { %v661_v35 = vmul.f32 %v3573_v51, %v590_v46  ;;  %v480_v8 = vmul.f32 2.0, %v2940_v15  ;;  %2949 = vrsqrt.f32 %v403_v26 }
  0xd2   :  { %v545_v12 = vmul.f32 %v481_v22, %v3313_v24  ;;  %2951 = vrsqrt.f32 %v402_v47  ;;  %v201_v9 = vpop.xlane.xlu1 %200 }
  0xd3   :  { %v198_v33 = vpop.xlane.xlu0 %197  ;;  %v2942_v20 = vpop.eup %2941  ;;  %v544_v13 = vmul.f32 %v480_v8, %v3318_v25  ;;  %v3677_v36 = vpack.c.bf16 %v662_v34, %v661_v35  ;;  %v357_v39 = vmax.f32 %v201_v9, 1e-24 }
  0xd4   :  { %v356_v52 = vmax.f32 %v198_v33, 1e-24  ;;  %v2944_v1 = vpop.eup %2943  ;;  %v529_v27 = vmul.f32 2.0, %v2942_v20  ;;  %v616_v24 = vmul.f32 %v3573_v51, %v545_v12 }
  0xd5   :  { %v528_v21 = vmul.f32 2.0, %v2944_v1  ;;  %2272 = vmatmul.mubr.msk.bf16.gmra.mrb[20].mxu0 %vm147_vm0, %v3674_v23  ;;  %2296 = vmatmul.mubr.msk.bf16.gmra.mrb[20].mxu1 %vm147_vm0, %v3677_v36  ;;  %2953 = vrsqrt.f32 %v357_v39  ;;  %v615_v53 = vmul.f32 %v3573_v51, %v544_v13 }
  0xd6   :  { %v593_v25 = vmul.f32 %v529_v27, %v3334_v37  ;;  %2955 = vrsqrt.f32 %v356_v52  ;;  %915 = vmatprep.mubr.bf16.mxu0 %v4082_v0  ;;  %1155 = vmatprep.mubr.bf16.mxu1 %v4082_v0  ;;  %v207_v40 = vpop.xlane.xlu1 %206 }
  0xd7   :  { %v204_v2 = vpop.xlane.xlu0 %203  ;;  %v2946_v16 = vpop.eup %2945  ;;  %v592_v41 = vmul.f32 %v528_v21, %v3339_v38  ;;  %v359_v42 = vmax.f32 %v207_v40, 1e-24  ;;  %v3691_v37 = vpack.c.bf16 %v616_v24, %v615_v53 }
  0xd8   :  { %v358_v59 = vmax.f32 %v204_v2, 1e-24  ;;  %v2948_v49 = vpop.eup %2947  ;;  %v664_v60 = vmul.f32 %v3573_v51, %v593_v25  ;;  %v483_v17 = vmul.f32 2.0, %v2946_v16 }
  0xd9   :  { %v663_v63 = vmul.f32 %v3573_v51, %v592_v41  ;;  %v482_v11 = vmul.f32 2.0, %v2948_v49  ;;  %2957 = vrsqrt.f32 %v359_v42 }
  0xda   :  { %2959 = vrsqrt.f32 %v358_v59  ;;  %v213_v46 = vpop.xlane.xlu1 %212  ;;  %v547_v15 = vmul.f32 %v483_v17, %v3350_v45 }
  0xdb   :  { %v210_v26 = vpop.xlane.xlu0 %209  ;;  %v2950_v47 = vpop.eup %2949  ;;  %v546_v38 = vmul.f32 %v482_v11, %v3355_v48  ;;  %v3695_v34 = vpack.c.bf16 %v664_v60, %v663_v63  ;;  %v361_v22 = vmax.f32 %v213_v46, 1e-24 }
  0xdc   :  { %v2952_v35 = vpop.eup %2951  ;;  %v531_v8 = vmul.f32 2.0, %v2950_v47  ;;  %v360_v12 = vmax.f32 %v210_v26, 1e-24  ;;  %v618_v48 = vmul.f32 %v3573_v51, %v547_v15 }
  0xdd   :  { %v530_v9 = vmul.f32 2.0, %v2952_v35  ;;  %2273 = vmatmul.mubr.msk.bf16.gmra.mrb[24].mxu0 %vm147_vm0, %v3691_v37  ;;  %2297 = vmatmul.mubr.msk.bf16.gmra.mrb[24].mxu1 %vm147_vm0, %v3695_v34  ;;  %v617_v20 = vmul.f32 %v3573_v51, %v546_v38  ;;  %2961 = vrsqrt.f32 %v361_v22 }
  0xde   :  { %v595_v33 = vmul.f32 %v531_v8, %v3366_v55  ;;  %925 = vmatprep.mubr.bf16.mxu0 %v4082_v0  ;;  %1165 = vmatprep.mubr.bf16.mxu1 %v4082_v0  ;;  %v219_v39 = vpop.xlane.xlu1 %218  ;;  %2963 = vrsqrt.f32 %v360_v12 }
  0xdf   :  { %v2954_v45 = vpop.eup %2953  ;;  %v594_v13 = vmul.f32 %v530_v9, %v3371_v56  ;;  %v216_v21 = vpop.xlane.xlu0 %215  ;;  %v3711_v2 = vpack.c.bf16 %v618_v48, %v617_v20  ;;  %v363_v56 = vmax.f32 %v219_v39, 1e-24 }
  0xe0   :  { %v2956_v52 = vpop.eup %2955  ;;  %v666_v1 = vmul.f32 %v3573_v51, %v595_v33  ;;  %v485_v27 = vmul.f32 2.0, %v2954_v45  ;;  %v362_v59 = vmax.f32 %v216_v21, 1e-24 }
  0xe1   :  { %v665_v55 = vmul.f32 %v3573_v51, %v594_v13  ;;  %v484_v24 = vmul.f32 2.0, %v2956_v52  ;;  %2965 = vrsqrt.f32 %v363_v56 }
  0xe2   :  { %v549_v53 = vmul.f32 %v485_v27, %v3382_v3  ;;  %v225_v41 = vpop.xlane.xlu1 %224  ;;  %2967 = vrsqrt.f32 %v362_v59 }
  0xe3   :  { %v2958_v25 = vpop.eup %2957  ;;  %v548_v40 = vmul.f32 %v484_v24, %v3387_v4  ;;  %v3713_v16 = vpack.c.bf16 %v666_v1, %v665_v55  ;;  %v222_v49 = vpop.xlane.xlu0 %221  ;;  %v365_v22 = vmax.f32 %v225_v41, 1e-24 }
  0xe4   :  { %v2960_v42 = vpop.eup %2959  ;;  %v620_v60 = vmul.f32 %v3573_v51, %v549_v53  ;;  %v487_v63 = vmul.f32 2.0, %v2958_v25  ;;  %v364_v8 = vmax.f32 %v222_v49, 1e-24 }
  0xe5   :  { %v619_v17 = vmul.f32 %v3573_v51, %v548_v40  ;;  %v486_v11 = vmul.f32 2.0, %v2960_v42  ;;  %2274 = vmatmul.mubr.msk.bf16.gmra.mrb[28].mxu0 %vm147_vm0, %v3711_v2  ;;  %2298 = vmatmul.mubr.msk.bf16.gmra.mrb[28].mxu1 %vm147_vm0, %v3713_v16  ;;  %2969 = vrsqrt.f32 %v365_v22 }
  0xe6   :  { %2813 = vmatprep.mubr.msk.bf16.mxu1 %vm147_vm0, %v3586_v62  ;;  %935 = vmatprep.mubr.bf16.mxu0 %v4082_v0  ;;  %v231_v3 = vpop.xlane.xlu1 %230  ;;  %v551_v26 = vmul.f32 %v487_v63, %v3398_v18  ;;  %2971 = vrsqrt.f32 %v364_v8 }
  0xe7   :  { %v228_v4 = vpop.xlane.xlu0 %227  ;;  %v2962_v46 = vpop.eup %2961  ;;  %v550_v47 = vmul.f32 %v486_v11, %v3403_v19  ;;  %v3726_v15 = vpack.c.bf16 %v620_v60, %v619_v17  ;;  %v367_v1 = vmax.f32 %v231_v3, 1e-24 }
  0xe8   :  { %v2964_v38 = vpop.eup %2963  ;;  %v622_v62 = vmul.f32 %v3573_v51, %v551_v26  ;;  %v489_v33 = vmul.f32 2.0, %v2962_v46  ;;  %v366_v27 = vmax.f32 %v228_v4, 1e-24 }
  0xe9   :  { %v621_v9 = vmul.f32 %v3573_v51, %v550_v47  ;;  %v488_v45 = vmul.f32 2.0, %v2964_v38  ;;  %2973 = vrsqrt.f32 %v367_v1 }
  0xea   :  { %v237_v35 = vpop.xlane.xlu1 %236  ;;  %v553_v20 = vmul.f32 %v489_v33, %v3418_v31  ;;  %2975 = vrsqrt.f32 %v366_v27 }
  0xeb   :  { %v234_v12 = vpop.xlane.xlu0 %233  ;;  %v2966_v48 = vpop.eup %2965  ;;  %v552_v13 = vmul.f32 %v488_v45, %v3423_v32  ;;  %v3739_v39 = vpack.c.bf16 %v622_v62, %v621_v9  ;;  %v369_v41 = vmax.f32 %v237_v35, 1e-24 }
  0xec   :  { %v2968_v52 = vpop.eup %2967  ;;  %v491_v21 = vmul.f32 2.0, %v2966_v48  ;;  %v368_v59 = vmax.f32 %v234_v12, 1e-24 }
  0xed   :  { %2275 = vmatmul.mubr.msk.bf16.gmra.mrb[32].mxu0 %vm147_vm0, %v3726_v15  ;;  %2814 = vmatmul.mubr.msk.bf16.vlgmr.msra.gmra.mrb[32].mxu1 %vm147_vm0, %v3602_v61  ;;  %v624_v61 = vmul.f32 %v3573_v51, %v553_v20  ;;  %v490_v55 = vmul.f32 2.0, %v2968_v52  ;;  %2977 = vrsqrt.f32 %v369_v41 }
  0xee   :  { %2817 = vmatprep.mubr.msk.bf16.mxu1 %vm147_vm0, %v3620_v50  ;;  %945 = vmatprep.mubr.bf16.mxu0 %v4082_v0  ;;  %v243_v18 = vpop.xlane.xlu1 %242  ;;  %v623_v50 = vmul.f32 %v3573_v51, %v552_v13  ;;  %v555_v53 = vmul.f32 %v491_v21, %v3434_v43  ;;  %2979 = vrsqrt.f32 %v368_v59  ;;  %v4084_v21 = vld [vmem:[#allocation9_spill] sm:$0xff] }
  0xef   :  { %v240_v19 = vpop.xlane.xlu0 %239  ;;  %v2970_v24 = vpop.eup %2969  ;;  %v554_v25 = vmul.f32 %v490_v55, %v3439_v44  ;;  %v371_v46 = vmax.f32 %v243_v18, 1e-24 }
  0xf0   :  { %v677_v40 = vpack.c.bf16 %v624_v61, %v623_v50  ;;  %v2972_v56 = vpop.eup %2971  ;;  %v626_v49 = vmul.f32 %v3573_v51, %v555_v53  ;;  %v493_v60 = vmul.f32 2.0, %v2970_v24  ;;  %v370_v47 = vmax.f32 %v240_v19, 1e-24  ;;  %v4083_v61 = vld [vmem:[#allocation8_spill] sm:$0xff] }
  0xf1   :  { %v492_v17 = vmul.f32 2.0, %v2972_v56  ;;  %2981 = vrsqrt.f32 %v371_v46 }
  0xf2   :  { %v249_v31 = vpop.xlane.xlu1 %248  ;;  %v557_v44 = vmul.f32 %v493_v60, %v3450_v57  ;;  %2983 = vrsqrt.f32 %v370_v47 }
  0xf3   :  { %v246_v32 = vpop.xlane.xlu0 %245  ;;  %v2974_v43 = vpop.eup %2973  ;;  %v556_v63 = vmul.f32 %v492_v17, %v3455_v58  ;;  %v373_v38 = vmax.f32 %v249_v31, 1e-24 }
  0xf4   :  { %v2976_v4 = vpop.eup %2975  ;;  %v372_v57 = vmax.f32 %v246_v32, 1e-24 }
  0xf5   :  { %2276 = vmatmul.mubr.msk.bf16.gmra.mrb[36].mxu0 %vm147_vm0, %v3739_v39  ;;  %2818 = vmatmul.mubr.msk.bf16.gmra.mrb[36].mxu1 %vm147_vm0, %v3638_v28  ;;  %v627_v22 = vmul.f32 %v3573_v51, %v556_v63  ;;  %v494_v35 = vmul.f32 2.0, %v2976_v4  ;;  %2985 = vrsqrt.f32 %v373_v38  ;;  %v3018_v63 = vld [vmem:[%s4071_s0 + $0xf0] sm:$0xff]  ;;  %v3019_v4 = vld [vmem:[%s4071_s0 + $0x108] sm:$0xff]  ;;  %v3020_v38 = vld [vmem:[%s4071_s0 + $0x100] sm:$0xff] }
  0xf6   :  { %2821 = vmatprep.mubr.msk.bf16.mxu1 %vm147_vm0, %v3656_v14  ;;  %955 = vmatprep.mubr.bf16.mxu0 %v4082_v0  ;;  %v255_v42 = vpop.xlane.xlu1 %254  ;;  %v625_v14 = vmul.f32 %v3573_v51, %v554_v25  ;;  %2987 = vrsqrt.f32 %v372_v57 }
  0xf7   :  { %v252_v28 = vpop.xlane.xlu0 %251  ;;  %v2978_v62 = vpop.eup %2977  ;;  %v558_v9 = vmul.f32 %v494_v35, %v3471_v10 }
  0xf8   :  { %v3762_v11 = vpack.c.bf16 %v626_v49, %v625_v14  ;;  %v2980_v45 = vpop.eup %2979  ;;  %v374_v18 = vmax.f32 %v252_v28, 1e-24  ;;  %v497_v20 = vmul.f32 2.0, %v2978_v62 }
  0xf9   :  { %v629_v48 = vmul.f32 %v3573_v51, %v558_v9  ;;  %v496_v13 = vmul.f32 2.0, %v2980_v45 }
  0xfa   :  { %v261_v3 = vpop.xlane.xlu1 %260  ;;  %v561_v50 = vmul.f32 %v497_v20, %v4083_v61 }
  0xfb   :  { %v258_v26 = vpop.xlane.xlu0 %257  ;;  %v2982_v1 = vpop.eup %2981  ;;  %v560_v55 = vmul.f32 %v496_v13, %v4084_v21  ;;  %v3023_v21 = vld [vmem:[%s4071_s0 + $0x128] sm:$0xff] }
  0xfc   :  { %v2984_v27 = vpop.eup %2983  ;;  %v632_v59 = vmul.f32 %v3573_v51, %v561_v50 }
  0xfd   :  { %2277 = vmatmul.mubr.msk.bf16.gmra.mrb[40].mxu0 %vm147_vm0, %v677_v40  ;;  %2822 = vmatmul.mubr.msk.bf16.gmra.mrb[40].mxu1 %vm147_vm0, %v3674_v23  ;;  %v495_v23 = vmul.f32 2.0, %v2974_v43  ;;  %v498_v56 = vmul.f32 2.0, %v2984_v27  ;;  %v631_v28 = vmul.f32 %v3573_v51, %v560_v55  ;;  %v3017_v43 = vld [vmem:[%s4071_s0 + $0xf8] sm:$0xff] }
  0xfe   :  { %2825 = vmatprep.mubr.msk.bf16.mxu1 %vm147_vm0, %v3691_v37  ;;  %965 = vmatprep.mubr.bf16.mxu0 %v4082_v0  ;;  %v628_v37 = vmul.f32 %v3573_v51, %v557_v44  ;;  %v267_v58 = vpop.xlane.xlu1 %266 }
  0xff   :  { %v559_v8 = vmul.f32 %v495_v23, %v3466_v7  ;;  %v264_v12 = vpop.xlane.xlu0 %263  ;;  %v376_v7 = vmax.f32 %v258_v26, 1e-24  ;;  %v2986_v32 = vpop.eup %2985  ;;  %v681_v26 = vpack.c.bf16 %v632_v59, %v631_v28 }
 0x100   :  { %v679_v33 = vpack.c.bf16 %v628_v37, %v627_v22  ;;  %v2988_v24 = vpop.eup %2987  ;;  %v378_v53 = vmax.f32 %v264_v12, 1e-24  ;;  %v501_v49 = vmul.f32 2.0, %v2986_v32 }
 0x101   :  { %v630_v19 = vmul.f32 %v3573_v51, %v559_v8  ;;  %v500_v60 = vmul.f32 2.0, %v2988_v24 }
 0x102   :  { %v273_v52 = vpop.xlane.xlu1 %272  ;;  %v565_v46 = vmul.f32 %v3019_v4, %v501_v49 }
 0x103   :  { %v270_v10 = vpop.xlane.xlu0 %269  ;;  %v680_v31 = vpack.c.bf16 %v630_v19, %v629_v48  ;;  %v381_v41 = vmax.f32 %v273_v52, 1e-24  ;;  %v564_v37 = vmul.f32 %v3020_v38, %v500_v60 }
 0x104   :  { %v380_v14 = vmax.f32 %v270_v10, 1e-24  ;;  %v636_v9 = vmul.f32 %v3573_v51, %v565_v46  ;;  %v3022_v10 = vld [vmem:[%s4071_s0 + $0x110] sm:$0xff]  ;;  %v3027_v46 = vld [vmem:[%s4071_s0 + $0x148] sm:$0xff] }
 0x105   :  { %2278 = vmatmul.mubr.msk.bf16.gmra.mrb[44].mxu0 %vm147_vm0, %v3762_v11  ;;  %2826 = vmatmul.mubr.msk.bf16.gmra.mrb[44].mxu1 %vm147_vm0, %v3711_v2  ;;  %v375_v2 = vmax.f32 %v255_v42, 1e-24 }
 0x106   :  { %2829 = vmatprep.mubr.msk.bf16.mxu1 %vm147_vm0, %v3726_v15  ;;  %975 = vmatprep.mubr.bf16.mxu0 %v4082_v0  ;;  %v377_v15 = vmax.f32 %v261_v3, 1e-24  ;;  %v279_v25 = vpop.xlane.xlu1 %278  ;;  %v562_v3 = vmul.f32 %v3018_v63, %v498_v56  ;;  %v3026_v63 = vld [vmem:[%s4071_s0 + $0x130] sm:$0xff] }
 0x107   :  { %2989 = vrsqrt.f32 %v375_v2  ;;  %v276_v42 = vpop.xlane.xlu0 %275  ;;  %v383_v22 = vmax.f32 %v279_v25, 1e-24 }
 0x108   :  { %2991 = vrsqrt.f32 %v374_v18  ;;  %v633_v12 = vmul.f32 %v3573_v51, %v562_v3  ;;  %v635_v18 = vmul.f32 %v3573_v51, %v564_v37 }
 0x109   :  { %2993 = vrsqrt.f32 %v377_v15 }
 0x10a   :  { %2995 = vrsqrt.f32 %v376_v7  ;;  %v285_v47 = vpop.xlane.xlu1 %284  ;;  %v3021_v7 = vld [vmem:[%s4071_s0 + $0x118] sm:$0xff] }
 0x10b   :  { %v282_v35 = vpop.xlane.xlu0 %281  ;;  %v385_v62 = vmax.f32 %v285_v47, 1e-24  ;;  %v3028_v47 = vld [vmem:[%s4071_s0 + $0x140] sm:$0xff] }
 0x10c   :  { %v384_v2 = vmax.f32 %v282_v35, 1e-24 }
 0x10d   :  { %2279 = vmatmul.mubr.msk.bf16.gmra.mrb[48].mxu0 %vm147_vm0, %v679_v33  ;;  %2830 = vmatmul.mubr.msk.bf16.gmra.mrb[48].mxu1 %vm147_vm0, %v3739_v39  ;;  %v379_v39 = vmax.f32 %v267_v58, 1e-24  ;;  %v382_v58 = vmax.f32 %v276_v42, 1e-24 }
 0x10e   :  { %2833 = vmatprep.mubr.msk.bf16.mxu1 %vm147_vm0, %v677_v40  ;;  %985 = vmatprep.mubr.bf16.mxu0 %v4082_v0  ;;  %v499_v40 = vmul.f32 2.0, %v2982_v1  ;;  %v291_v20 = vpop.xlane.xlu1 %290 }
 0x10f   :  { %2997 = vrsqrt.f32 %v379_v39  ;;  %v288_v61 = vpop.xlane.xlu0 %287  ;;  %v683_v39 = vpack.c.bf16 %v636_v9, %v635_v18  ;;  %v3030_v18 = vld [vmem:[%s4071_s0 + $0x150] sm:$0xff] }
 0x110   :  { %2999 = vrsqrt.f32 %v378_v53  ;;  %v563_v44 = vmul.f32 %v3017_v43, %v499_v40  ;;  %v387_v53 = vmax.f32 %v291_v20, 1e-24  ;;  %v386_v25 = vmax.f32 %v288_v61, 1e-24  ;;  %v3025_v43 = vld [vmem:[%s4071_s0 + $0x138] sm:$0xff]  ;;  %v3031_v20 = vld [vmem:[%s4071_s0 + $0x168] sm:$0xff] }
 0x111   :  { %v2990_v17 = vpop.eup %2989  ;;  %3001 = vrsqrt.f32 %v381_v41 }
 0x112   :  { %3003 = vrsqrt.f32 %v380_v14  ;;  %v634_v8 = vmul.f32 %v3573_v51, %v563_v44 }
 0x113   :  { %3005 = vrsqrt.f32 %v383_v22 }
 0x114   :  { %3007 = vrsqrt.f32 %v382_v58  ;;  %v682_v27 = vpack.c.bf16 %v634_v8, %v633_v12 }
 0x115   :  { %2280 = vmatmul.mubr.msk.bf16.gmra.mrb[52].mxu0 %vm147_vm0, %v680_v31  ;;  %2834 = vmatmul.mubr.msk.bf16.gmra.mrb[52].mxu1 %vm147_vm0, %v3762_v11  ;;  %v2992_v11 = vpop.eup %2991  ;;  %3009 = vrsqrt.f32 %v385_v62 }
 0x116   :  { %2837 = vmatprep.mubr.msk.bf16.mxu1 %vm147_vm0, %v679_v33  ;;  %995 = vmatprep.mubr.bf16.mxu0 %v4082_v0  ;;  %v2994_v23 = vpop.eup %2993  ;;  %v503_v33 = vmul.f32 2.0, %v2990_v17  ;;  %v502_v45 = vmul.f32 2.0, %v2992_v11  ;;  %3011 = vrsqrt.f32 %v384_v2 }
 0x117   :  { %v2996_v57 = vpop.eup %2995  ;;  %v505_v19 = vmul.f32 2.0, %v2994_v23  ;;  %3013 = vrsqrt.f32 %v387_v53 }
 0x118   :  { %v504_v15 = vmul.f32 2.0, %v2996_v57  ;;  %v567_v52 = vmul.f32 %v3021_v7, %v503_v33  ;;  %v566_v1 = vmul.f32 %v3022_v10, %v502_v45  ;;  %3015 = vrsqrt.f32 %v386_v25  ;;  %v3029_v45 = vld [vmem:[%s4071_s0 + $0x158] sm:$0xff]  ;;  %v3032_v7 = vld [vmem:[%s4071_s0 + $0x160] sm:$0xff] }
 0x119   :  { %v2998_v48 = vpop.eup %2997  ;;  %v569_v55 = vmul.f32 %v3023_v21, %v505_v19 }
 0x11a   :  { %v3000_v13 = vpop.eup %2999  ;;  %v638_v40 = vmul.f32 %v3573_v51, %v567_v52  ;;  %v637_v56 = vmul.f32 %v3573_v51, %v566_v1  ;;  %v507_v41 = vmul.f32 2.0, %v2998_v48 }
 0x11b   :  { %v3002_v50 = vpop.eup %3001  ;;  %v506_v42 = vmul.f32 2.0, %v3000_v13  ;;  %v640_v59 = vmul.f32 %v3573_v51, %v569_v55 }
 0x11c   :  { %v3004_v24 = vpop.eup %3003  ;;  %v509_v49 = vmul.f32 2.0, %v3002_v50  ;;  %v571_v44 = vmul.f32 %v3025_v43, %v507_v41  ;;  %v684_v11 = vpack.c.bf16 %v638_v40, %v637_v56 }
 0x11d   :  { %2281 = vmatmul.mubr.msk.bf16.gmra.mrb[56].mxu0 %vm147_vm0, %v681_v26  ;;  %2838 = vmatmul.mubr.msk.bf16.gmra.mrb[56].mxu1 %vm147_vm0, %v680_v31  ;;  %v3024_v31 = vld [vmem:[%s4071_s0 + $0x120] sm:$0xff]  ;;  %v508_v14 = vmul.f32 2.0, %v3004_v24  ;;  %v3006_v60 = vpop.eup %3005  ;;  %v570_v3 = vmul.f32 %v3026_v63, %v506_v42 }
 0x11e   :  { %2841 = vmatprep.mubr.msk.bf16.mxu1 %vm147_vm0, %v681_v26  ;;  %1005 = vmatprep.mubr.bf16.mxu0 %v4082_v0  ;;  %v568_v32 = vmul.f32 %v3024_v31, %v504_v15  ;;  %v3008_v17 = vpop.eup %3007  ;;  %v573_v26 = vmul.f32 %v3027_v46, %v509_v49  ;;  %v642_v22 = vmul.f32 %v3573_v51, %v571_v44  ;;  %v511_v57 = vmul.f32 2.0, %v3006_v60  ;;  %v3033_v31 = vld [vmem:[%s4071_s0 + $0x178] sm:$0xff] }
 0x11f   :  { %v3010_v4 = vpop.eup %3009  ;;  %v572_v23 = vmul.f32 %v3028_v47, %v508_v14  ;;  %v641_v35 = vmul.f32 %v3573_v51, %v570_v3  ;;  %v510_v58 = vmul.f32 2.0, %v3008_v17 }
 0x120   :  { %v639_v28 = vmul.f32 %v3573_v51, %v568_v32  ;;  %v3012_v37 = vpop.eup %3011  ;;  %v644_v8 = vmul.f32 %v3573_v51, %v573_v26  ;;  %v513_v62 = vmul.f32 2.0, %v3010_v4  ;;  %v575_v2 = vmul.f32 %v3029_v45, %v511_v57 }
 0x121   :  { %v643_v12 = vmul.f32 %v3573_v51, %v572_v23  ;;  %v512_v9 = vmul.f32 2.0, %v3012_v37  ;;  %v3014_v33 = vpop.eup %3013  ;;  %v574_v19 = vmul.f32 %v3030_v18, %v510_v58  ;;  %v686_v15 = vpack.c.bf16 %v642_v22, %v641_v35 }
 0x122   :  { %v685_v38 = vpack.c.bf16 %v640_v59, %v639_v28  ;;  %v3016_v48 = vpop.eup %3015  ;;  %v577_v13 = vmul.f32 %v3031_v20, %v513_v62  ;;  %v646_v1 = vmul.f32 %v3573_v51, %v575_v2  ;;  %v515_v61 = vmul.f32 2.0, %v3014_v33 }
 0x123   :  { %v576_v52 = vmul.f32 %v3032_v7, %v512_v9  ;;  %v687_v10 = vpack.c.bf16 %v644_v8, %v643_v12  ;;  %v514_v50 = vmul.f32 2.0, %v3016_v48 }
 0x124   :  { %v648_v21 = vmul.f32 %v3573_v51, %v577_v13  ;;  %v579_v32 = vmul.f32 %v3033_v31, %v515_v61 }
 0x125   :  { %2282 = vmatmul.mubr.msk.bf16.gmra.mrb[60].mxu0 %vm147_vm0, %v682_v27  ;;  %2842 = vmatmul.mubr.msk.bf16.gmra.mrb[60].mxu1 %vm147_vm0, %v682_v27  ;;  %v645_v27 = vmul.f32 %v3573_v51, %v574_v19  ;;  %v647_v55 = vmul.f32 %v3573_v51, %v576_v52  ;;  %v3035_v51 = vld [vmem:[%s4072_s1] ss:$0 sm:$0xff] }
 0x126   :  { %2845 = vmatprep.mubr.msk.bf16.mxu1 %vm147_vm0, %v683_v39  ;;  %1015 = vmatprep.mubr.bf16.mxu0 %v4082_v0  ;;  %v650_v40 = vmul.f32 %v3035_v51, %v579_v32 }
 0x127   :  { %v688_v53 = vpack.c.bf16 %v646_v1, %v645_v27  ;;  %v689_v25 = vpack.c.bf16 %v648_v21, %v647_v55 }
 0x12d   :  { %2283 = vmatmul.mubr.msk.bf16.gmra.mrb[64].mxu0 %vm147_vm0, %v683_v39  ;;  %2846 = vmatmul.mubr.msk.bf16.gmra.mrb[64].mxu1 %vm147_vm0, %v684_v11  ;;  %v3034_v39 = vld [vmem:[%s4071_s0 + $0x170] sm:$0xff]  ;;  %s3086_s0 = smov [#allocation2]  }
 0x12e   :  { %2849 = vmatprep.mubr.msk.bf16.mxu1 %vm147_vm0, %v685_v38  ;;  %1025 = vmatprep.mubr.bf16.mxu0 %v4082_v0  ;;  %v578_v24 = vmul.f32 %v3034_v39, %v514_v50  ;;  %s2238_s1 = sshll.u32 %s3086_s0, 4  ;;  %s4030_s1 = int_to_ptr.vmem [resolvable:$true] %s2238_s1 }
 0x12f   :  { %s3036_s26 = scalar_lea.vmem %s4030_s1, 4096  ;;  %p3041_p1 = scmp.lt.s32.totalorder %s4030_s1, %s4030_s1 }
 0x130   :  { %v649_v56 = vmul.f32 %v3035_v51, %v578_v24  ;;  %p3037_p0 = scmp.ne.s32.totalorder %s4030_s1, %s3036_s26  ;;  %p3042_p2 = scmp.lt.s32.totalorder %s3036_s26, %s3036_s26 }
 0x132   :  { %v690_v41 = vpack.c.bf16 %v650_v40, %v649_v56  ;;  %p3043_p3 = por %p3042_p2, %p3041_p1 }
 0x134   :  { %p3044_p4 = pnand %p3043_p3, %p3037_p0 }
 0x135   :  { %2284 = vmatmul.mubr.msk.bf16.gmra.mrb[68].mxu0 %vm147_vm0, %v684_v11  ;;  %2850 = vmatmul.mubr.msk.bf16.gmra.mrb[68].mxu1 %vm147_vm0, %v686_v15 }
 0x136   :  { %2853 = vmatprep.mubr.msk.bf16.mxu1 %vm147_vm0, %v687_v10  ;;  %1035 = vmatprep.mubr.bf16.mxu0 %v4082_v0 }
 0x13d   :  { %2285 = vmatmul.mubr.msk.bf16.gmra.mrb[72].mxu0 %vm147_vm0, %v685_v38  ;;  %2854 = vmatmul.mubr.msk.bf16.gmra.mrb[72].mxu1 %vm147_vm0, %v688_v53 }
 0x13e   :  { %2857 = vmatprep.mubr.msk.bf16.mxu1 %vm147_vm0, %v689_v25  ;;  %1045 = vmatprep.mubr.bf16.mxu0 %v4082_v0 }
 0x145   :  { %2286 = vmatmul.mubr.msk.bf16.gmra.mrb[76].mxu0 %vm147_vm0, %v686_v15  ;;  %2858 = vmatmul.mubr.msk.bf16.gmra.mrb[76].mxu1 %vm147_vm0, %v690_v41 }
 0x146   :  { %2861 = vmatprep.mubr.msk.bf16.mxu1 %vm147_vm0, %v3583_v6  ;;  %1055 = vmatprep.mubr.bf16.mxu0 %v4082_v0 }
 0x14d   :  { %2287 = vmatmul.mubr.msk.bf16.gmra.mrb[80].mxu0 %vm147_vm0, %v687_v10  ;;  %2862 = vmatmul.mubr.msk.bf16.gmra.mrb[80].mxu1 %vm147_vm0, %v3605_v54 }
 0x14e   :  { %2865 = vmatprep.mubr.msk.bf16.mxu1 %vm147_vm0, %v3623_v5  ;;  %1065 = vmatprep.mubr.bf16.mxu0 %v4082_v0 }
 0x155   :  { %2288 = vmatmul.mubr.msk.bf16.gmra.mrb[84].mxu0 %vm147_vm0, %v688_v53  ;;  %2866 = vmatmul.mubr.msk.bf16.gmra.mrb[84].mxu1 %vm147_vm0, %v3641_v29 }
 0x156   :  { %2869 = vmatprep.mubr.msk.bf16.mxu1 %vm147_vm0, %v3659_v30  ;;  %1075 = vmatprep.mubr.bf16.mxu0 %v4082_v0 }
 0x15d   :  { %2289 = vmatmul.mubr.msk.bf16.gmra.mrb[88].mxu0 %vm147_vm0, %v689_v25  ;;  %2870 = vmatmul.mubr.msk.bf16.gmra.mrb[88].mxu1 %vm147_vm0, %v3677_v36 }
 0x15e   :  { %2873 = vmatprep.mubr.msk.bf16.mxu1 %vm147_vm0, %v3695_v34  ;;  %1085 = vmatprep.mubr.bf16.mxu0 %v4082_v0 }
 0x165   :  { %2290 = vmatmul.mubr.msk.bf16.gmra.mrb[92].mxu0 %vm147_vm0, %v690_v41  ;;  %2874 = vmatmul.mubr.msk.bf16.gmra.mrb[92].mxu1 %vm147_vm0, %v3713_v16 }
 0x17f   :  { %v1097_v6 = vpop.f32.mrb[0].mxu1 }
 0x180   :  { %v857_v54 = vpop.f32.mrb[0].mxu0  ;;  %v3910_v5 = vpop.f32.mrb[1].mxu1 }
 0x181   :  { %v3912_v29 = vpop.f32.mrb[1].mxu0  ;;  %v1101_v30 = vpop.f32.mrb[2].mxu1 }
 0x182   :  { %v861_v42 = vpop.f32.mrb[2].mxu0  ;;  %v2710_v59 = vpack.c.bf16 %v1101_v30, %v1097_v6  ;;  %v3914_v36 = vpop.f32.mrb[3].mxu1 }
 0x183   :  { %v2590_v28 = vpack.c.bf16 %v861_v42, %v857_v54  ;;  %v3916_v34 = vpop.f32.mrb[3].mxu0 }
 0x184   :  { %2770 = vst [vmem:[#allocation2 + $0xc0] sm:$0xff] %v2710_v59  }
 0x185   :  { %2591 = vst [vmem:[#allocation2] sm:$0xff] %v2590_v28  }
 0x188   :  { %v867_v0 = vpop.f32.mrb[4].mxu0  ;;  %v1107_v49 = vpop.f32.mrb[4].mxu1 }
 0x189   :  { %v3918_v14 = vpop.f32.mrb[5].mxu0  ;;  %v3920_v16 = vpop.f32.mrb[5].mxu1 }
 0x18a   :  { %v871_v60 = vpop.f32.mrb[6].mxu0  ;;  %v1111_v17 = vpop.f32.mrb[6].mxu1 }
 0x18b   :  { %v2595_v43 = vpack.c.bf16 %v871_v60, %v867_v0  ;;  %v2715_v44 = vpack.c.bf16 %v1111_v17, %v1107_v49  ;;  %v3922_v63 = vpop.f32.mrb[7].mxu0  ;;  %v3924_v3 = vpop.f32.mrb[7].mxu1 }
 0x18d   :  { %2747 = vst [vmem:[#allocation2 + $0x8] sm:$0xff] %v2595_v43   ;;  %2771 = vst [vmem:[#allocation2 + $0xc8] sm:$0xff] %v2715_v44  }
 0x190   :  { %v877_v11 = vpop.f32.mrb[8].mxu0  ;;  %v1117_v4 = vpop.f32.mrb[8].mxu1 }
 0x191   :  { %v3926_v46 = vpop.f32.mrb[9].mxu0  ;;  %v3928_v26 = vpop.f32.mrb[9].mxu1 }
 0x192   :  { %v881_v47 = vpop.f32.mrb[10].mxu0  ;;  %v1121_v23 = vpop.f32.mrb[10].mxu1 }
 0x193   :  { %v2600_v38 = vpack.c.bf16 %v881_v47, %v877_v11  ;;  %v2720_v37 = vpack.c.bf16 %v1121_v23, %v1117_v4  ;;  %v3930_v22 = vpop.f32.mrb[11].mxu0  ;;  %v3932_v35 = vpop.f32.mrb[11].mxu1 }
 0x195   :  { %2748 = vst [vmem:[#allocation2 + $0x10] sm:$0xff] %v2600_v38   ;;  %2772 = vst [vmem:[#allocation2 + $0xd0] sm:$0xff] %v2720_v37  }
 0x198   :  { %v887_v57 = vpop.f32.mrb[12].mxu0  ;;  %v1127_v58 = vpop.f32.mrb[12].mxu1 }
 0x199   :  { %v3934_v8 = vpop.f32.mrb[13].mxu0  ;;  %v3936_v12 = vpop.f32.mrb[13].mxu1 }
 0x19a   :  { %v891_v62 = vpop.f32.mrb[14].mxu0  ;;  %v1131_v9 = vpop.f32.mrb[14].mxu1 }
 0x19b   :  { %v2605_v33 = vpack.c.bf16 %v891_v62, %v887_v57  ;;  %v2725_v45 = vpack.c.bf16 %v1131_v9, %v1127_v58  ;;  %v3938_v2 = vpop.f32.mrb[15].mxu0  ;;  %v3940_v18 = vpop.f32.mrb[15].mxu1 }
 0x19d   :  { %2749 = vst [vmem:[#allocation2 + $0x18] sm:$0xff] %v2605_v33   ;;  %2773 = vst [vmem:[#allocation2 + $0xd8] sm:$0xff] %v2725_v45  }
 0x1a0   :  { %v897_v19 = vpop.f32.mrb[16].mxu0  ;;  %v1137_v15 = vpop.f32.mrb[16].mxu1 }
 0x1a1   :  { %v3942_v48 = vpop.f32.mrb[17].mxu0  ;;  %v3944_v20 = vpop.f32.mrb[17].mxu1 }
 0x1a2   :  { %v901_v13 = vpop.f32.mrb[18].mxu0  ;;  %v1141_v7 = vpop.f32.mrb[18].mxu1 }
 0x1a3   :  { %v2610_v52 = vpack.c.bf16 %v901_v13, %v897_v19  ;;  %v2730_v10 = vpack.c.bf16 %v1141_v7, %v1137_v15  ;;  %v3946_v1 = vpop.f32.mrb[19].mxu0  ;;  %v3948_v27 = vpop.f32.mrb[19].mxu1 }
 0x1a5   :  { %2750 = vst [vmem:[#allocation2 + $0x20] sm:$0xff] %v2610_v52   ;;  %2774 = vst [vmem:[#allocation2 + $0xe0] sm:$0xff] %v2730_v10  }
 0x1a8   :  { %v907_v61 = vpop.f32.mrb[20].mxu0  ;;  %v1147_v50 = vpop.f32.mrb[20].mxu1 }
 0x1a9   :  { %v3950_v21 = vpop.f32.mrb[21].mxu0  ;;  %v3952_v55 = vpop.f32.mrb[21].mxu1 }
 0x1aa   :  { %v911_v31 = vpop.f32.mrb[22].mxu0  ;;  %v1151_v32 = vpop.f32.mrb[22].mxu1 }
 0x1ab   :  { %v2615_v39 = vpack.c.bf16 %v911_v31, %v907_v61  ;;  %v2735_v24 = vpack.c.bf16 %v1151_v32, %v1147_v50  ;;  %v3954_v53 = vpop.f32.mrb[23].mxu0  ;;  %v3956_v25 = vpop.f32.mrb[23].mxu1 }
 0x1ad   :  { %2751 = vst [vmem:[#allocation2 + $0x28] sm:$0xff] %v2615_v39   ;;  %2775 = vst [vmem:[#allocation2 + $0xe8] sm:$0xff] %v2735_v24  }
 0x1b0   :  { %v917_v51 = vpop.f32.mrb[24].mxu0  ;;  %v1157_v40 = vpop.f32.mrb[24].mxu1 }
 0x1b1   :  { %v3958_v56 = vpop.f32.mrb[25].mxu0  ;;  %v3960_v41 = vpop.f32.mrb[25].mxu1 }
 0x1b2   :  { %v921_v6 = vpop.f32.mrb[26].mxu0  ;;  %v1161_v54 = vpop.f32.mrb[26].mxu1 }
 0x1b3   :  { %v2620_v30 = vpack.c.bf16 %v921_v6, %v917_v51  ;;  %v2740_v42 = vpack.c.bf16 %v1161_v54, %v1157_v40  ;;  %v3962_v59 = vpop.f32.mrb[27].mxu0  ;;  %v3964_v28 = vpop.f32.mrb[27].mxu1 }
 0x1b5   :  { %2752 = vst [vmem:[#allocation2 + $0x30] sm:$0xff] %v2620_v30   ;;  %2776 = vst [vmem:[#allocation2 + $0xf0] sm:$0xff] %v2740_v42  }
 0x1b8   :  { %v927_v0 = vpop.f32.mrb[28].mxu0  ;;  %v1167_v49 = vpop.f32.mrb[28].mxu1 }
 0x1b9   :  { %v3966_v60 = vpop.f32.mrb[29].mxu0  ;;  %v3968_v17 = vpop.f32.mrb[29].mxu1 }
 0x1ba   :  { %v931_v43 = vpop.f32.mrb[30].mxu0  ;;  %v1171_v44 = vpop.f32.mrb[30].mxu1 }
 0x1bb   :  { %v2625_v11 = vpack.c.bf16 %v931_v43, %v927_v0  ;;  %v2745_v4 = vpack.c.bf16 %v1171_v44, %v1167_v49  ;;  %v3970_v47 = vpop.f32.mrb[31].mxu0  ;;  %v3972_v23 = vpop.f32.mrb[31].mxu1 }
 0x1bd   :  { %2753 = vst [vmem:[#allocation2 + $0x38] sm:$0xff] %v2625_v11   ;;  %2777 = vst [vmem:[#allocation2 + $0xf8] sm:$0xff] %v2745_v4  }
 0x1c0   :  { %v937_v38 = vpop.f32.mrb[32].mxu0  ;;  %v2815_v37 = vpop.f32.mrb[32].mxu1 }
 0x1c1   :  { %v2525_v57 = vpack.c.bf16 %v2815_v37, %v3918_v14  ;;  %v3975_v58 = vpop.f32.mrb[33].mxu0  ;;  %v1210_v62 = vpop.f32.mrb[33].mxu1 }
 0x1c2   :  { %v2523_v9 = vpack.c.bf16 %v1210_v62, %v3912_v29  ;;  %v941_v33 = vpop.f32.mrb[34].mxu0  ;;  %v2816_v45 = vpop.f32.mrb[34].mxu1 }
 0x1c3   :  { %2171 = vst [vmem:[#allocation4 + $0x10] sm:$0xff] %v2525_v57  ;;  %v2630_v19 = vpack.c.bf16 %v941_v33, %v937_v38  ;;  %v2526_v15 = vpack.c.bf16 %v2816_v45, %v3922_v63  ;;  %v3979_v13 = vpop.f32.mrb[35].mxu0  ;;  %v1213_v7 = vpop.f32.mrb[35].mxu1 }
 0x1c4   :  { %2169 = vst [vmem:[#allocation4] sm:$0xff] %v2523_v9  ;;  %v2524_v52 = vpack.c.bf16 %v1213_v7, %v3916_v34 }
 0x1c5   :  { %2754 = vst [vmem:[#allocation2 + $0x40] sm:$0xff] %v2630_v19   ;;  %2172 = vst [vmem:[#allocation4 + $0x18] sm:$0xff] %v2526_v15 }
 0x1c6   :  { %2170 = vst [vmem:[#allocation4 + $0x8] sm:$0xff] %v2524_v52 }
 0x1c8   :  { %v947_v14 = vpop.f32.mrb[36].mxu0  ;;  %v2819_v10 = vpop.f32.mrb[36].mxu1 }
 0x1c9   :  { %v2529_v61 = vpack.c.bf16 %v2819_v10, %v3934_v8  ;;  %v949_v29 = vpop.f32.mrb[37].mxu0  ;;  %v1226_v50 = vpop.f32.mrb[37].mxu1 }
 0x1ca   :  { %v2527_v31 = vpack.c.bf16 %v1226_v50, %v3926_v46  ;;  %v951_v32 = vpop.f32.mrb[38].mxu0  ;;  %v2820_v39 = vpop.f32.mrb[38].mxu1 }
 0x1cb   :  { %2175 = vst [vmem:[#allocation4 + $0x30] sm:$0xff] %v2529_v61  ;;  %v2635_v63 = vpack.c.bf16 %v951_v32, %v947_v14  ;;  %v2530_v24 = vpack.c.bf16 %v2820_v39, %v3938_v2  ;;  %v953_v51 = vpop.f32.mrb[39].mxu0  ;;  %v1229_v40 = vpop.f32.mrb[39].mxu1 }
 0x1cc   :  { %2173 = vst [vmem:[#allocation4 + $0x20] sm:$0xff] %v2527_v31  ;;  %v2528_v34 = vpack.c.bf16 %v1229_v40, %v3930_v22 }
 0x1cd   :  { %2755 = vst [vmem:[#allocation2 + $0x48] sm:$0xff] %v2635_v63   ;;  %2176 = vst [vmem:[#allocation4 + $0x38] sm:$0xff] %v2530_v24 }
 0x1ce   :  { %2174 = vst [vmem:[#allocation4 + $0x28] sm:$0xff] %v2528_v34 }
 0x1d0   :  { %v957_v6 = vpop.f32.mrb[40].mxu0  ;;  %v2823_v8 = vpop.f32.mrb[40].mxu1 }
 0x1d1   :  { %v2533_v54 = vpack.c.bf16 %v2823_v8, %v3950_v21  ;;  %v3987_v30 = vpop.f32.mrb[41].mxu0  ;;  %v1242_v46 = vpop.f32.mrb[41].mxu1 }
 0x1d2   :  { %v2531_v42 = vpack.c.bf16 %v1242_v46, %v3942_v48  ;;  %v961_v0 = vpop.f32.mrb[42].mxu0  ;;  %v2824_v49 = vpop.f32.mrb[42].mxu1 }
 0x1d3   :  { %2179 = vst [vmem:[#allocation4 + $0x50] sm:$0xff] %v2533_v54  ;;  %v2640_v2 = vpack.c.bf16 %v961_v0, %v957_v6  ;;  %v2534_v43 = vpack.c.bf16 %v2824_v49, %v3954_v53  ;;  %v963_v44 = vpop.f32.mrb[43].mxu0  ;;  %v1245_v22 = vpop.f32.mrb[43].mxu1 }
 0x1d4   :  { %2177 = vst [vmem:[#allocation4 + $0x40] sm:$0xff] %v2531_v42  ;;  %v2532_v11 = vpack.c.bf16 %v1245_v22, %v3946_v1 }
 0x1d5   :  { %2756 = vst [vmem:[#allocation2 + $0x50] sm:$0xff] %v2640_v2   ;;  %2180 = vst [vmem:[#allocation4 + $0x58] sm:$0xff] %v2534_v43 }
 0x1d6   :  { %2178 = vst [vmem:[#allocation4 + $0x48] sm:$0xff] %v2532_v11 }
 0x1d8   :  { %v967_v21 = vpop.f32.mrb[44].mxu0  ;;  %v2827_v4 = vpop.f32.mrb[44].mxu1 }
 0x1d9   :  { %v2537_v38 = vpack.c.bf16 %v2827_v4, %v3966_v60  ;;  %v969_v37 = vpop.f32.mrb[45].mxu0  ;;  %v1258_v48 = vpop.f32.mrb[45].mxu1 }
 0x1da   :  { %v2535_v57 = vpack.c.bf16 %v1258_v48, %v3958_v56  ;;  %v971_v62 = vpop.f32.mrb[46].mxu0  ;;  %v2828_v9 = vpop.f32.mrb[46].mxu1 }
 0x1db   :  { %2183 = vst [vmem:[#allocation4 + $0x70] sm:$0xff] %v2537_v38  ;;  %v2645_v53 = vpack.c.bf16 %v971_v62, %v967_v21  ;;  %v2538_v33 = vpack.c.bf16 %v2828_v9, %v3970_v47  ;;  %v973_v45 = vpop.f32.mrb[47].mxu0  ;;  %v1261_v19 = vpop.f32.mrb[47].mxu1 }
 0x1dc   :  { %2181 = vst [vmem:[#allocation4 + $0x60] sm:$0xff] %v2535_v57  ;;  %v2536_v1 = vpack.c.bf16 %v1261_v19, %v3962_v59 }
 0x1dd   :  { %2757 = vst [vmem:[#allocation2 + $0x58] sm:$0xff] %v2645_v53   ;;  %2184 = vst [vmem:[#allocation4 + $0x78] sm:$0xff] %v2538_v33 }
 0x1de   :  { %2182 = vst [vmem:[#allocation4 + $0x68] sm:$0xff] %v2536_v1 }
 0x1e0   :  { %v977_v15 = vpop.f32.mrb[48].mxu0  ;;  %v2831_v60 = vpop.f32.mrb[48].mxu1 }
 0x1e1   :  { %v2541_v7 = vpack.c.bf16 %v2831_v60, %v949_v29  ;;  %v979_v52 = vpop.f32.mrb[49].mxu0  ;;  %v1274_v14 = vpop.f32.mrb[49].mxu1 }
 0x1e2   :  { %v2539_v56 = vpack.c.bf16 %v1274_v14, %v3975_v58  ;;  %v981_v10 = vpop.f32.mrb[50].mxu0  ;;  %v2832_v61 = vpop.f32.mrb[50].mxu1 }
 0x1e3   :  { %2187 = vst [vmem:[#allocation4 + $0x90] sm:$0xff] %v2541_v7  ;;  %v2650_v50 = vpack.c.bf16 %v981_v10, %v977_v15  ;;  %v2542_v47 = vpack.c.bf16 %v2832_v61, %v953_v51  ;;  %v983_v31 = vpop.f32.mrb[51].mxu0  ;;  %v1277_v32 = vpop.f32.mrb[51].mxu1 }
 0x1e4   :  { %2185 = vst [vmem:[#allocation4 + $0x80] sm:$0xff] %v2539_v56  ;;  %v2540_v59 = vpack.c.bf16 %v1277_v32, %v3979_v13 }
 0x1e5   :  { %2758 = vst [vmem:[#allocation2 + $0x60] sm:$0xff] %v2650_v50   ;;  %2188 = vst [vmem:[#allocation4 + $0x98] sm:$0xff] %v2542_v47 }
 0x1e6   :  { %2186 = vst [vmem:[#allocation4 + $0x88] sm:$0xff] %v2540_v59 }
 0x1e8   :  { %v987_v39 = vpop.f32.mrb[52].mxu0  ;;  %v2835_v63 = vpop.f32.mrb[52].mxu1 }
 0x1e9   :  { %v2545_v29 = vpack.c.bf16 %v2835_v63, %v969_v37  ;;  %v989_v24 = vpop.f32.mrb[53].mxu0  ;;  %v1290_v40 = vpop.f32.mrb[53].mxu1 }
 0x1ea   :  { %v2543_v58 = vpack.c.bf16 %v1290_v40, %v3987_v30  ;;  %v991_v34 = vpop.f32.mrb[54].mxu0  ;;  %v2836_v6 = vpop.f32.mrb[54].mxu1 }
 0x1eb   :  { %2191 = vst [vmem:[#allocation4 + $0xb0] sm:$0xff] %v2545_v29  ;;  %v2655_v8 = vpack.c.bf16 %v991_v34, %v987_v39  ;;  %v2546_v51 = vpack.c.bf16 %v2836_v6, %v973_v45  ;;  %v993_v54 = vpop.f32.mrb[55].mxu0  ;;  %v1293_v46 = vpop.f32.mrb[55].mxu1 }
 0x1ec   :  { %2189 = vst [vmem:[#allocation4 + $0xa0] sm:$0xff] %v2543_v58  ;;  %v2544_v42 = vpack.c.bf16 %v1293_v46, %v963_v44 }
 0x1ed   :  { %2759 = vst [vmem:[#allocation2 + $0x68] sm:$0xff] %v2655_v8   ;;  %2192 = vst [vmem:[#allocation4 + $0xb8] sm:$0xff] %v2546_v51 }
 0x1ee   :  { %2190 = vst [vmem:[#allocation4 + $0xa8] sm:$0xff] %v2544_v42 }
 0x1f0   :  { %v997_v13 = vpop.f32.mrb[56].mxu0  ;;  %v2839_v0 = vpop.f32.mrb[56].mxu1 }
 0x1f1   :  { %v2549_v49 = vpack.c.bf16 %v2839_v0, %v989_v24  ;;  %v999_v2 = vpop.f32.mrb[57].mxu0  ;;  %v1306_v43 = vpop.f32.mrb[57].mxu1 }
 0x1f2   :  { %v2547_v22 = vpack.c.bf16 %v1306_v43, %v979_v52  ;;  %v1001_v11 = vpop.f32.mrb[58].mxu0  ;;  %v2840_v30 = vpop.f32.mrb[58].mxu1 }
 0x1f3   :  { %2195 = vst [vmem:[#allocation4 + $0xd0] sm:$0xff] %v2549_v49  ;;  %v2660_v21 = vpack.c.bf16 %v1001_v11, %v997_v13  ;;  %v2550_v4 = vpack.c.bf16 %v2840_v30, %v993_v54  ;;  %v1003_v38 = vpop.f32.mrb[59].mxu0  ;;  %v1309_v37 = vpop.f32.mrb[59].mxu1 }
 0x1f4   :  { %2193 = vst [vmem:[#allocation4 + $0xc0] sm:$0xff] %v2547_v22  ;;  %v2548_v48 = vpack.c.bf16 %v1309_v37, %v983_v31 }
 0x1f5   :  { %2760 = vst [vmem:[#allocation2 + $0x70] sm:$0xff] %v2660_v21   ;;  %2196 = vst [vmem:[#allocation4 + $0xd8] sm:$0xff] %v2550_v4 }
 0x1f6   :  { %2194 = vst [vmem:[#allocation4 + $0xc8] sm:$0xff] %v2548_v48 }
 0x1f8   :  { %v1007_v44 = vpop.f32.mrb[60].mxu0  ;;  %v2843_v57 = vpop.f32.mrb[60].mxu1 }
 0x1f9   :  { %v1009_v62 = vpop.f32.mrb[61].mxu0  ;;  %v1322_v9 = vpop.f32.mrb[61].mxu1 }
 0x1fa   :  { %v2553_v53 = vpack.c.bf16 %v2843_v57, %v1009_v62  ;;  %v2551_v33 = vpack.c.bf16 %v1322_v9, %v999_v2  ;;  %v1011_v45 = vpop.f32.mrb[62].mxu0  ;;  %v2844_v19 = vpop.f32.mrb[62].mxu1 }
 0x1fb   :  { %v2665_v1 = vpack.c.bf16 %v1011_v45, %v1007_v44  ;;  %v1013_v15 = vpop.f32.mrb[63].mxu0  ;;  %v1325_v60 = vpop.f32.mrb[63].mxu1 }
 0x1fc   :  { %2199 = vst [vmem:[#allocation4 + $0xf0] sm:$0xff] %v2553_v53  ;;  %2197 = vst [vmem:[#allocation4 + $0xe0] sm:$0xff] %v2551_v33  ;;  %v2554_v7 = vpack.c.bf16 %v2844_v19, %v1013_v15  ;;  %v2552_v52 = vpack.c.bf16 %v1325_v60, %v1003_v38 }
 0x1fd   :  { %2761 = vst [vmem:[#allocation2 + $0x78] sm:$0xff] %v2665_v1  }
 0x1fe   :  { %2200 = vst [vmem:[#allocation4 + $0xf8] sm:$0xff] %v2554_v7  ;;  %2198 = vst [vmem:[#allocation4 + $0xe8] sm:$0xff] %v2552_v52 }
 0x200   :  { %v1017_v14 = vpop.f32.mrb[64].mxu0  ;;  %v2847_v56 = vpop.f32.mrb[64].mxu1 }
 0x201   :  { %v1019_v10 = vpop.f32.mrb[65].mxu0  ;;  %v1338_v61 = vpop.f32.mrb[65].mxu1 }
 0x202   :  { %v2555_v50 = vpack.c.bf16 %v1338_v61, %v1019_v10  ;;  %v1021_v47 = vpop.f32.mrb[66].mxu0  ;;  %v2848_v31 = vpop.f32.mrb[66].mxu1 }
 0x203   :  { %v2670_v32 = vpack.c.bf16 %v1021_v47, %v1017_v14  ;;  %v1023_v59 = vpop.f32.mrb[67].mxu0  ;;  %v1341_v39 = vpop.f32.mrb[67].mxu1 }
 0x204   :  { %2201 = vst [vmem:[#allocation4 + $0x100] sm:$0xff] %v2555_v50  ;;  %v2556_v63 = vpack.c.bf16 %v1341_v39, %v1023_v59 }
 0x205   :  { %2762 = vst [vmem:[#allocation2 + $0x80] sm:$0xff] %v2670_v32  }
 0x206   :  { %2202 = vst [vmem:[#allocation4 + $0x108] sm:$0xff] %v2556_v63 }
 0x208   :  { %v1027_v29 = vpop.f32.mrb[68].mxu0  ;;  %v2851_v24 = vpop.f32.mrb[68].mxu1 }
 0x209   :  { %v1029_v40 = vpop.f32.mrb[69].mxu0  ;;  %v1354_v58 = vpop.f32.mrb[69].mxu1 }
 0x20a   :  { %v2557_v34 = vpack.c.bf16 %v2847_v56, %v1029_v40  ;;  %v1031_v6 = vpop.f32.mrb[70].mxu0  ;;  %v2852_v8 = vpop.f32.mrb[70].mxu1 }
 0x20b   :  { %v2675_v51 = vpack.c.bf16 %v1031_v6, %v1027_v29  ;;  %v1033_v54 = vpop.f32.mrb[71].mxu0  ;;  %v1357_v46 = vpop.f32.mrb[71].mxu1 }
 0x20c   :  { %2203 = vst [vmem:[#allocation4 + $0x110] sm:$0xff] %v2557_v34  ;;  %v2558_v42 = vpack.c.bf16 %v2848_v31, %v1033_v54 }
 0x20d   :  { %2763 = vst [vmem:[#allocation2 + $0x88] sm:$0xff] %v2675_v51  }
 0x20e   :  { %2204 = vst [vmem:[#allocation4 + $0x118] sm:$0xff] %v2558_v42 }
 0x210   :  { %v1037_v13 = vpop.f32.mrb[72].mxu0  ;;  %v3999_v0 = vpop.f32.mrb[72].mxu1 }
 0x211   :  { %v1039_v49 = vpop.f32.mrb[73].mxu0  ;;  %v1370_v2 = vpop.f32.mrb[73].mxu1 }
 0x212   :  { %v2559_v43 = vpack.c.bf16 %v1354_v58, %v1039_v49  ;;  %v1041_v22 = vpop.f32.mrb[74].mxu0  ;;  %v4001_v11 = vpop.f32.mrb[74].mxu1 }
 0x213   :  { %v2680_v30 = vpack.c.bf16 %v1041_v22, %v1037_v13  ;;  %v1043_v21 = vpop.f32.mrb[75].mxu0  ;;  %v1373_v4 = vpop.f32.mrb[75].mxu1 }
 0x214   :  { %2205 = vst [vmem:[#allocation4 + $0x120] sm:$0xff] %v2559_v43  ;;  %v2560_v38 = vpack.c.bf16 %v1357_v46, %v1043_v21 }
 0x215   :  { %2764 = vst [vmem:[#allocation2 + $0x90] sm:$0xff] %v2680_v30  }
 0x216   :  { %2206 = vst [vmem:[#allocation4 + $0x128] sm:$0xff] %v2560_v38 }
 0x218   :  { %v1047_v37 = vpop.f32.mrb[76].mxu0  ;;  %v4003_v48 = vpop.f32.mrb[76].mxu1 }
 0x219   :  { %v1049_v44 = vpop.f32.mrb[77].mxu0  ;;  %v4005_v57 = vpop.f32.mrb[77].mxu1 }
 0x21a   :  { %v2561_v62 = vpack.c.bf16 %v2851_v24, %v1049_v44  ;;  %v1051_v9 = vpop.f32.mrb[78].mxu0  ;;  %v4007_v53 = vpop.f32.mrb[78].mxu1 }
 0x21b   :  { %v2685_v33 = vpack.c.bf16 %v1051_v9, %v1047_v37  ;;  %v1053_v45 = vpop.f32.mrb[79].mxu0  ;;  %v4009_v19 = vpop.f32.mrb[79].mxu1 }
 0x21c   :  { %2207 = vst [vmem:[#allocation4 + $0x130] sm:$0xff] %v2561_v62  ;;  %v2562_v1 = vpack.c.bf16 %v2852_v8, %v1053_v45 }
 0x21d   :  { %2765 = vst [vmem:[#allocation2 + $0x98] sm:$0xff] %v2685_v33  }
 0x21e   :  { %2208 = vst [vmem:[#allocation4 + $0x138] sm:$0xff] %v2562_v1 }
 0x220   :  { %v1057_v15 = vpop.f32.mrb[80].mxu0  ;;  %v2863_v60 = vpop.f32.mrb[80].mxu1 }
 0x221   :  { %v2573_v7 = vpack.c.bf16 %v2863_v60, %v3920_v16  ;;  %v1059_v52 = vpop.f32.mrb[81].mxu0  ;;  %v1402_v14 = vpop.f32.mrb[81].mxu1 }
 0x222   :  { %v2563_v56 = vpack.c.bf16 %v1370_v2, %v1059_v52  ;;  %v2571_v10 = vpack.c.bf16 %v1402_v14, %v3910_v5  ;;  %v1061_v61 = vpop.f32.mrb[82].mxu0  ;;  %v2864_v50 = vpop.f32.mrb[82].mxu1 }
 0x223   :  { %2219 = vst [vmem:[#allocation4 + $0x190] sm:$0xff] %v2573_v7  ;;  %v2690_v47 = vpack.c.bf16 %v1061_v61, %v1057_v15  ;;  %v2574_v31 = vpack.c.bf16 %v2864_v50, %v3924_v3  ;;  %v1063_v32 = vpop.f32.mrb[83].mxu0  ;;  %v1405_v59 = vpop.f32.mrb[83].mxu1 }
 0x224   :  { %2209 = vst [vmem:[#allocation4 + $0x140] sm:$0xff] %v2563_v56  ;;  %2217 = vst [vmem:[#allocation4 + $0x180] sm:$0xff] %v2571_v10  ;;  %v2564_v39 = vpack.c.bf16 %v1373_v4, %v1063_v32  ;;  %v2572_v63 = vpack.c.bf16 %v1405_v59, %v3914_v36 }
 0x225   :  { %2766 = vst [vmem:[#allocation2 + $0xa0] sm:$0xff] %v2690_v47   ;;  %2220 = vst [vmem:[#allocation4 + $0x198] sm:$0xff] %v2574_v31 }
 0x226   :  { %2210 = vst [vmem:[#allocation4 + $0x148] sm:$0xff] %v2564_v39  ;;  %2218 = vst [vmem:[#allocation4 + $0x188] sm:$0xff] %v2572_v63 }
 0x228   :  { %v1067_v16 = vpop.f32.mrb[84].mxu0  ;;  %v2867_v29 = vpop.f32.mrb[84].mxu1 }
 0x229   :  { %v2577_v5 = vpack.c.bf16 %v2867_v29, %v3936_v12  ;;  %v1069_v24 = vpop.f32.mrb[85].mxu0  ;;  %v1418_v40 = vpop.f32.mrb[85].mxu1 }
 0x22a   :  { %v2565_v58 = vpack.c.bf16 %v3999_v0, %v1069_v24  ;;  %v2575_v3 = vpack.c.bf16 %v1418_v40, %v3928_v26  ;;  %v1071_v34 = vpop.f32.mrb[86].mxu0  ;;  %v2868_v6 = vpop.f32.mrb[86].mxu1 }
 0x22b   :  { %2223 = vst [vmem:[#allocation4 + $0x1b0] sm:$0xff] %v2577_v5  ;;  %v2695_v8 = vpack.c.bf16 %v1071_v34, %v1067_v16  ;;  %v2578_v36 = vpack.c.bf16 %v2868_v6, %v3940_v18  ;;  %v1073_v51 = vpop.f32.mrb[87].mxu0  ;;  %v1421_v54 = vpop.f32.mrb[87].mxu1 }
 0x22c   :  { %2211 = vst [vmem:[#allocation4 + $0x150] sm:$0xff] %v2565_v58  ;;  %2221 = vst [vmem:[#allocation4 + $0x1a0] sm:$0xff] %v2575_v3  ;;  %v2566_v46 = vpack.c.bf16 %v4001_v11, %v1073_v51  ;;  %v2576_v12 = vpack.c.bf16 %v1421_v54, %v3932_v35 }
 0x22d   :  { %2767 = vst [vmem:[#allocation2 + $0xa8] sm:$0xff] %v2695_v8   ;;  %2224 = vst [vmem:[#allocation4 + $0x1b8] sm:$0xff] %v2578_v36 }
 0x22e   :  { %2212 = vst [vmem:[#allocation4 + $0x158] sm:$0xff] %v2566_v46  ;;  %2222 = vst [vmem:[#allocation4 + $0x1a8] sm:$0xff] %v2576_v12 }
 0x230   :  { %v1077_v42 = vpop.f32.mrb[88].mxu0  ;;  %v2871_v26 = vpop.f32.mrb[88].mxu1 }
 0x231   :  { %v2581_v13 = vpack.c.bf16 %v2871_v26, %v3952_v55  ;;  %v1079_v0 = vpop.f32.mrb[89].mxu0  ;;  %v1434_v49 = vpop.f32.mrb[89].mxu1 }
 0x232   :  { %v2567_v18 = vpack.c.bf16 %v4005_v57, %v1079_v0  ;;  %v2579_v2 = vpack.c.bf16 %v1434_v49, %v3944_v20  ;;  %v1081_v43 = vpop.f32.mrb[90].mxu0  ;;  %v2872_v22 = vpop.f32.mrb[90].mxu1 }
 0x233   :  { %2227 = vst [vmem:[#allocation4 + $0x1d0] sm:$0xff] %v2581_v13  ;;  %v2700_v11 = vpack.c.bf16 %v1081_v43, %v1077_v42  ;;  %v2582_v35 = vpack.c.bf16 %v2872_v22, %v3956_v25  ;;  %v1083_v30 = vpop.f32.mrb[91].mxu0  ;;  %v1437_v21 = vpop.f32.mrb[91].mxu1 }
 0x234   :  { %2213 = vst [vmem:[#allocation4 + $0x160] sm:$0xff] %v2567_v18  ;;  %2225 = vst [vmem:[#allocation4 + $0x1c0] sm:$0xff] %v2579_v2  ;;  %v2568_v4 = vpack.c.bf16 %v4009_v19, %v1083_v30  ;;  %v2580_v55 = vpack.c.bf16 %v1437_v21, %v3948_v27 }
 0x235   :  { %2768 = vst [vmem:[#allocation2 + $0xb0] sm:$0xff] %v2700_v11   ;;  %2228 = vst [vmem:[#allocation4 + $0x1d8] sm:$0xff] %v2582_v35 }
 0x236   :  { %2214 = vst [vmem:[#allocation4 + $0x168] sm:$0xff] %v2568_v4  ;;  %2226 = vst [vmem:[#allocation4 + $0x1c8] sm:$0xff] %v2580_v55 }
 0x238   :  { %v1087_v20 = vpop.f32.mrb[92].mxu0  ;;  %v2875_v38 = vpop.f32.mrb[92].mxu1 }
 0x239   :  { %v2585_v25 = vpack.c.bf16 %v2875_v38, %v3968_v17  ;;  %v1089_v37 = vpop.f32.mrb[93].mxu0  ;;  %v1450_v44 = vpop.f32.mrb[93].mxu1 }
 0x23a   :  { %v2569_v57 = vpack.c.bf16 %v4003_v48, %v1089_v37  ;;  %v2583_v62 = vpack.c.bf16 %v1450_v44, %v3960_v41  ;;  %v1091_v9 = vpop.f32.mrb[94].mxu0  ;;  %v2876_v27 = vpop.f32.mrb[94].mxu1 }
 0x23b   :  { %2231 = vst [vmem:[#allocation4 + $0x1f0] sm:$0xff] %v2585_v25  ;;  %v2705_v33 = vpack.c.bf16 %v1091_v9, %v1087_v20  ;;  %v2586_v45 = vpack.c.bf16 %v2876_v27, %v3972_v23  ;;  %v1093_v19 = vpop.f32.mrb[95].mxu0  ;;  %v1453_v1 = vpop.f32.mrb[95].mxu1 }
 0x23c   :  { %2215 = vst [vmem:[#allocation4 + $0x170] sm:$0xff] %v2569_v57  ;;  %2229 = vst [vmem:[#allocation4 + $0x1e0] sm:$0xff] %v2583_v62  ;;  %v2570_v17 = vpack.c.bf16 %v4007_v53, %v1093_v19  ;;  %v2584_v41 = vpack.c.bf16 %v1453_v1, %v3964_v28 }
 0x23d   :  { %2769 = vst [vmem:[#allocation2 + $0xb8] sm:$0xff] %v2705_v33   ;;  %2232 = vst [vmem:[#allocation4 + $0x1f8] sm:$0xff] %v2586_v45 }
 0x23e   :  { %2216 = vst [vmem:[#allocation4 + $0x178] sm:$0xff] %v2570_v17  ;;  %2230 = vst [vmem:[#allocation4 + $0x1e8] sm:$0xff] %v2584_v41 }
 0x23f   :  { %3047 = shalt.err (!%p3044_p4)
}
 0x240   :  { %s3048_s29 = scalar_lea.hbm %s4074_s3, 4096 }
 0x241   :  { %p3049_p5 = scmp.ne.s32.totalorder %s4074_s3, %s3048_s29  ;;  %p3052_p6 = scmp.lt.u32.totalorder %s3048_s29, %s4074_s3 }
 0x243   :  { %p3054_p7 = pnand %p3052_p6, %p3049_p5 }
 0x245   :  { %3057 = shalt.err (!%p3054_p7)
}
 0x246   :  { %s3088_s8 = smov 64   ;;  %s3089_s9 = smov 4  }
 0x247   :  { %2244 = dma.vmem_to_hbm [thread:$0]  %s4030_s1, 4096, %s4074_s3, [#allocation3], %s3088_s8, %s3088_s8, %s3089_s9  }
 0x248   :  { %s3058_s12 = scalar_lea.vmem %s4033_s25, 8192  ;;  %p3063_p9 = scmp.lt.s32.totalorder %s4033_s25, %s4033_s25 }
 0x249   :  { %p3059_p8 = scmp.ne.s32.totalorder %s4033_s25, %s3058_s12  ;;  %p3064_p10 = scmp.lt.s32.totalorder %s3058_s12, %s3058_s12 }
 0x24b   :  { %p3065_p11 = por %p3064_p10, %p3063_p9 }
 0x24d   :  { %p3066_p12 = pnand %p3065_p11, %p3059_p8 }
 0x24f   :  { %3069 = shalt.err (!%p3066_p12)
}
 0x250   :  { %s3070_s14 = scalar_lea.hbm %s4075_s4, 8192 }
 0x251   :  { %p3071_p13 = scmp.ne.s32.totalorder %s4075_s4, %s3070_s14  ;;  %p3074_p0 = scmp.lt.u32.totalorder %s3070_s14, %s4075_s4 }
 0x253   :  { %p3076_p1 = pnand %p3074_p0, %p3071_p13 }
 0x255   :  { %3079 = shalt.err (!%p3076_p1)
}
 0x256   :  { %s3090_s3 = smov 128   ;;  %s3091_s19 = smov 8  }
 0x257   :  { %2256 = dma.vmem_to_hbm [thread:$0]  %s4033_s25, 8192, %s4075_s4, [#allocation5], %s3090_s3, %s3090_s3, %s3091_s19  }
 0x258   :  { %3080 = dma.done.wait [#allocation3], 4096  }
 0x259   :  { %3081 = vsyncadd [#allocation3], 4294963200 }
 0x25a   :  { %3082 = dma.done.wait [#allocation5], 8192  }
 0x25b   :  { %3083 = vsyncadd [#allocation5], 4294959104 }
 0x25c   :  { %2263 = vsyncpa [#allocation3], 1 }
 0x25d   :  { %2264 = vsyncpa [#allocation5], 1 }

</bundles_post_ra>
